<compile_context>
chip_gen: v7x
topology: tpu7x:2x2x1
jax: 0.10.0
libtpu: 0.0.40
codegen_flags: <defaults>
</compile_context>

<pallas_src>
import functools
import math

import jax
import jax.numpy as jnp
from jax.experimental import pallas as pl
from jax.experimental.pallas import tpu as pltpu


def _cdiv(a, b):
    return -(-a // b)


def _round_up(a, b):
    return _cdiv(a, b) * b


# --------------------------- hardware-derived budgets ---------------------------

_MXU_DEPTH = 256          # bf16 contraction depth of the systolic array (v6e/v7x; 128 on v5e)
_TILE_CAP = 2048          # upper bound on lanes per output tile


@functools.lru_cache(maxsize=None)
def _vmem_capacity_bytes():
    try:
        return int(pltpu.get_tpu_info().vmem_capacity_bytes)
    except Exception:
        return 64 * 1024 * 1024             # conservative default (v7x per-TensorCore VMEM)


def _tile_budget_bytes():
    # Size tiles against ~half of VMEM; the rest is headroom for the compiler.
    return min(_vmem_capacity_bytes() // 2, 56 * 1024 * 1024)


def _vmem_limit_bytes():
    return min((_vmem_capacity_bytes() * 3) // 4, 96 * 1024 * 1024)


# ----------------------------- Pallas kernel ---------------------------------

def _conv1d_kernel(*refs, K, dilation, t_tile, use_stack, pre_lrelu, post_tanh, fuse_res):
    if fuse_res:
        xm_ref, xh_ref, w_ref, b_ref, res_ref, o_ref = refs
    else:
        xm_ref, xh_ref, w_ref, b_ref, o_ref = refs
        res_ref = None

    xm = xm_ref[0]                                    # (C_in, t_tile)     main time tile
    xh = xh_ref[0]                                    # (C_in, hw>=halo)   lane-dense halo block
    win = jnp.concatenate([xm, xh], axis=-1)          # (C_in, t_tile + hw)
    if pre_lrelu:
        # LeakyReLU(0.1); zero padding maps to zero, so fusing after padding is exact.
        win = jnp.where(win >= 0, win, 0.1 * win)

    if use_stack:
        # im2col: ONE MXU matmul with contraction depth K*C_in (only when <= MXU depth).
        stacked = jnp.concatenate(
            [win[:, k * dilation:k * dilation + t_tile] for k in range(K)], axis=0)
        y = jnp.dot(w_ref[...], stacked, preferred_element_type=jnp.float32)
    else:
        # C_in already fills the systolic depth: K thin matmuls accumulated in f32,
        # ~Kx less VMEM scratch than the stacked operand.
        y = jnp.dot(w_ref[0], win[:, :t_tile], preferred_element_type=jnp.float32)
        for k in range(1, K):
            y = y + jnp.dot(w_ref[k], win[:, k * dilation:k * dilation + t_tile],
                            preferred_element_type=jnp.float32)

    y = y + b_ref[...]                                # (C_out, 1) broadcast over time
    if fuse_res:
        y = y + res_ref[0].astype(jnp.float32)        # fused MRF residual add
    if post_tanh:
        y = jnp.tanh(y)
    o_ref[0] = y.astype(o_ref.dtype)


# --------------------------- tiled conv wrapper --------------------------------

def _pick_t_tile(c_in, c_out, K, t_out, hw, use_stack, out_bytes, has_res):
    act = 2                                           # bf16 activations / weights
    fixed = (2 * c_out * K * c_in * act               # double-buffered weight block
             + 2 * c_in * hw * act                    # double-buffered halo block
             + 4 * c_out)                             # bias
    per_col = (2 * c_in * act                         # main input block  (x2 buffers)
               + 2 * c_out * out_bytes                # output block      (x2 buffers)
               + (2 * c_out * act if has_res else 0)  # residual block    (x2 buffers)
               + c_in * act                           # in-kernel window copy
               + (K * c_in * act if use_stack else c_in * act)   # stacked / shifted-tap temp
               + 2 * c_out * 4)                       # f32 accumulator + epilogue temp
    t = (_tile_budget_bytes() - fixed) // max(per_col, 1)
    t = (t // 128) * 128
    t = min(t, _TILE_CAP, _round_up(t_out, 128))
    t = max(t, 128, hw)
    if t % hw:
        t = _round_up(t, hw)
    return t


def _conv1d_tiled(x, w_oik, b, *, dilation, pad_l, pad_r, pre_lrelu=False,
                  post_tanh=False, residual=None, out_dtype=jnp.bfloat16):
    """Stride-1 cross-correlation (PyTorch Conv1d semantics) with explicit zero padding.

    out[b, co, t] = sum_{ci,k} w[co, ci, k] * xpad[b, ci, t + k*dilation]  (+ bias/res/act)
    x:        (B, C_in, T_in)   activations (computed in bf16)
    w_oik:    (C_out, C_in, K)  PyTorch Conv1d weight layout
    b:        (C_out,)          bias, added in f32
    residual: optional (B, C_out, T_out), fused into the epilogue.
    """
    B, C_in, T_in = x.shape
    C_out, _, K = w_oik.shape
    halo = dilation * (K - 1)
    T_out = T_in + pad_l + pad_r - halo
    assert T_out >= 1

    # Channel padding: bf16 packs 16 rows per vreg; output rows must be >= 8. Zeros are exact.
    c_in_p = _round_up(C_in, 16)
    c_out_p = _round_up(C_out, 8)

    use_stack = (K * c_in_p) <= _MXU_DEPTH
    out_bytes = jnp.dtype(out_dtype).itemsize
    hw = max(128, _round_up(halo, 128))               # lane-dense halo block width

    t_tile = _pick_t_tile(c_in_p, c_out_p, K, T_out, hw, use_stack, out_bytes,
                          residual is not None)
    if B == 1:
        # keep >= 4 time tiles so both v7x TensorCores get work from the parallel grid axes.
        cap = max(128, hw, _round_up(_cdiv(T_out, 4), 128))
        if cap % hw:
            cap = _round_up(cap, hw)
        t_tile = min(t_tile, cap)
    nt = _cdiv(T_out, t_tile)
    t_out_pad = nt * t_tile

    if x.dtype != jnp.bfloat16:
        x = x.astype(jnp.bfloat16)
    # One pad covers the conv padding, the time round-up to nt*t_tile + hw (keeps the halo
    # block of the last tile in bounds) and the channel round-up.
    # TODO(synk): masked edge tiles inside the kernel would remove this HBM copy entirely.
    xp = jnp.pad(x, ((0, 0), (0, c_in_p - C_in),
                     (pad_l, t_out_pad + hw - pad_l - T_in)))

    w_p = jnp.pad(w_oik, ((0, c_out_p - C_out), (0, c_in_p - C_in), (0, 0)))
    if use_stack:
        # (C_out, K*C_in), tap-major columns matching the in-kernel channel-axis stack.
        w_arr = jnp.transpose(w_p, (0, 2, 1)).reshape(c_out_p, K * c_in_p).astype(jnp.bfloat16)
        w_spec = pl.BlockSpec((c_out_p, K * c_in_p), lambda bi, ti: (0, 0))
    else:
        w_arr = jnp.transpose(w_p, (2, 0, 1)).astype(jnp.bfloat16)      # (K, C_out, C_in)
        w_spec = pl.BlockSpec((K, c_out_p, c_in_p), lambda bi, ti: (0, 0, 0))
    b2 = jnp.pad(b, (0, c_out_p - C_out)).reshape(c_out_p, 1).astype(jnp.float32)

    fuse_res = residual is not None
    hm = t_tile // hw                                  # halo block-index multiplier
    inputs = [xp, xp, w_arr, b2]
    in_specs = [
        pl.BlockSpec((1, c_in_p, t_tile), lambda bi, ti: (bi, 0, ti)),
        # The halo is the first `halo` columns of the next tile, read as a lane-dense
        # 128-multiple block of the SAME padded array (no separately materialized slab).
        pl.BlockSpec((1, c_in_p, hw), lambda bi, ti: (bi, 0, (ti + 1) * hm)),
        w_spec,
        pl.BlockSpec((c_out_p, 1), lambda bi, ti: (0, 0)),
    ]
    if fuse_res:
        res = residual
        if res.dtype != jnp.bfloat16:
            res = res.astype(jnp.bfloat16)
        res = jnp.pad(res, ((0, 0), (0, c_out_p - C_out), (0, t_out_pad - res.shape[-1])))
        inputs.append(res)
        in_specs.append(pl.BlockSpec((1, c_out_p, t_tile), lambda bi, ti: (bi, 0, ti)))

    kernel = functools.partial(_conv1d_kernel, K=K, dilation=dilation, t_tile=t_tile,
                               use_stack=use_stack, pre_lrelu=pre_lrelu,
                               post_tanh=post_tanh, fuse_res=fuse_res)

    cost = pl.CostEstimate(
        flops=2 * B * c_out_p * K * c_in_p * t_out_pad,
        transcendentals=(B * c_out_p * t_out_pad) if post_tanh else 0,
        bytes_accessed=int(B * c_in_p * (t_out_pad + hw) * 2
                           + B * nt * c_in_p * hw * 2
                           + w_arr.size * 2
                           + B * c_out_p * t_out_pad * out_bytes
                           + (B * c_out_p * t_out_pad * 2 if fuse_res else 0)),
    )

    out = pl.pallas_call(
        kernel,
        out_shape=jax.ShapeDtypeStruct((B, c_out_p, t_out_pad), out_dtype),
        grid=(B, nt),
        in_specs=in_specs,
        out_specs=pl.BlockSpec((1, c_out_p, t_tile), lambda bi, ti: (bi, 0, ti)),
        compiler_params=pltpu.CompilerParams(
            dimension_semantics=("parallel", "parallel"),
            vmem_limit_bytes=_vmem_limit_bytes()),
        cost_estimate=cost,
    )(*inputs)

    if c_out_p != C_out or t_out_pad != T_out:
        out = out[:, :C_out, :T_out]
    return out


# ------------------------------ layer wrappers ----------------------------------

def conv1d_same(x, w_pt, b, *, dilation=1, pre_lrelu=False, post_tanh=False,
                residual=None, out_dtype=jnp.bfloat16):
    # w_pt: PyTorch Conv1d weight (C_out, C_in, K); padding='same', stride 1, odd K.
    K = w_pt.shape[2]
    assert K % 2 == 1, "padding='same' path assumes odd kernel size"
    pad = dilation * (K - 1) // 2
    return _conv1d_tiled(x, w_pt, b, dilation=dilation, pad_l=pad, pad_r=pad,
                         pre_lrelu=pre_lrelu, post_tanh=post_tanh,
                         residual=residual, out_dtype=out_dtype)


def conv_transpose1d(x, w_pt, b, *, stride, padding, pre_lrelu=False,
                     out_dtype=jnp.bfloat16):
    """PyTorch ConvTranspose1d via polyphase decomposition (no zero-inserted signal).

    out[t = m*s + r] = sum_q x[m + q] * w[:, :, r + p - q*s].  The s phase filters are
    stacked on the output-channel axis so the kernel runs ONE stride-1 conv over the
    original frames; phases are interleaved with a contiguous reshape + small transpose.
    """
    C_in, C_out, K = w_pt.shape
    s, p = stride, padding
    assert s >= 1 and 0 <= p <= K - 1
    B, _, L = x.shape
    T_out = (L - 1) * s - 2 * p + K

    q_lo = -((K - 1 - p) // s)                       # = ceil((p - K + 1)/s)  (<= 0)
    q_hi = (s - 1 + p) // s
    Q = q_hi - q_lo + 1
    M = _cdiv(T_out, s)                              # frames per phase (extra frames sliced off)

    # Phase filter bank: row (r, c_out), tap j <-> q = q_lo + j, kernel index r + p - q*s.
    r_idx = jnp.arange(s)[:, None]
    j_idx = jnp.arange(Q)[None, :]
    k_idx = r_idx + p - (q_lo + j_idx) * s                        # (s, Q)
    valid = (k_idx >= 0) & (k_idx < K)
    taps = w_pt[:, :, jnp.clip(k_idx, 0, K - 1)]                  # (C_in, C_out, s, Q)
    taps = jnp.where(valid[None, None], taps, 0.0)
    w_bank = jnp.transpose(taps, (2, 1, 0, 3)).reshape(s * C_out, C_in, Q)
    b_bank = jnp.tile(b, s)

    pad_l = -q_lo
    pad_r = (M - 1 + q_hi) - (L - 1)
    assert pad_l >= 0 and pad_r >= 0

    y = _conv1d_tiled(x, w_bank, b_bank, dilation=1, pad_l=pad_l, pad_r=pad_r,
                      pre_lrelu=pre_lrelu, post_tanh=False, residual=None,
                      out_dtype=out_dtype)                        # (B, s*C_out, M) phase-major
    # Interleave phases: y[b, r*C_out + c, m] -> out[b, c, m*s + r].
    # TODO(synk): for bf16/s==2 a u32 pack+bitcast (or fusing the interleave into the next
    # conv) would remove this small transpose pass as well.
    y = y.reshape(B, s, C_out, M)
    y = jnp.transpose(y, (0, 2, 3, 1)).reshape(B, C_out, M * s)
    return y[:, :, :T_out]


# --------------------------- parameter building --------------------------------

def _uniform(key, shape, fan_in):
    bound = 1.0 / math.sqrt(fan_in)
    return jax.random.uniform(key, shape, jnp.float32, -bound, bound)


def init_generator_params(key, in_channels, h_u, k_u, k_r, D_r):
    params = {}
    key, k0, k0b = jax.random.split(key, 3)
    params["start_w"] = _uniform(k0, (h_u, in_channels, 7), in_channels * 7)
    params["start_b"] = _uniform(k0b, (h_u,), in_channels * 7)

    params["middle"] = []
    for i in range(len(k_u)):
        c_in = h_u // (2 ** i)
        c_out = c_in // 2
        kul = k_u[i]
        key, ku_w, ku_b = jax.random.split(key, 3)
        blk = {
            "up_w": _uniform(ku_w, (c_in, c_out, kul), c_in * kul),
            "up_b": _uniform(ku_b, (c_out,), c_in * kul),
            "mrf": [],
        }
        for r in range(len(D_r)):
            convs = []
            for _d in D_r[r]:
                key, kw, kb = jax.random.split(key, 3)
                convs.append({
                    "w": _uniform(kw, (c_out, c_out, k_r[r]), c_out * k_r[r]),
                    "b": _uniform(kb, (c_out,), c_out * k_r[r]),
                })
            blk["mrf"].append(convs)
        params["middle"].append(blk)

    c_last = h_u // (2 ** len(k_u))
    key, kl_w, kl_b = jax.random.split(key, 3)
    params["last_w"] = _uniform(kl_w, (1, c_last, 7), c_last * 7)
    params["last_b"] = _uniform(kl_b, (1,), c_last * 7)
    return params


# ------------------------------ forward pass -----------------------------------

def generator_forward(params, x, k_u, k_r, D_r):
    # start_conv (no activation)
    x = conv1d_same(x, params["start_w"], params["start_b"], dilation=1)

    # middle blocks: LeakyReLU -> ConvTranspose1d (polyphase) -> MRF
    for i, blk in enumerate(params["middle"]):
        kul = k_u[i]
        x = conv_transpose1d(x, blk["up_w"], blk["up_b"],
                             stride=kul // 2, padding=kul // 4, pre_lrelu=True)
        # MRF: x = x + ResBlockConv_r(x); the residual add is fused into the last conv.
        # TODO(synk): fusing both convs of a resblock into one pallas_call would halve the
        # inter-layer HBM traffic of these mem-bound middle layers.
        for r in range(len(D_r)):
            y = x
            nd = len(D_r[r])
            for j, d in enumerate(D_r[r]):
                cj = blk["mrf"][r][j]
                y = conv1d_same(y, cj["w"], cj["b"], dilation=d, pre_lrelu=True,
                                residual=x if j == nd - 1 else None)
            x = y

    # last: LeakyReLU -> Conv1d -> Tanh, all fused; f32 output.
    x = conv1d_same(x, params["last_w"], params["last_b"], dilation=1,
                    pre_lrelu=True, post_tanh=True, out_dtype=jnp.float32)
    return x


# --------------------------- pure-JAX f32 reference ------------------------------

def _conv1d_same_ref(x, w, b, dilation):
    pad = dilation * (w.shape[2] - 1) // 2
    y = jax.lax.conv_general_dilated(
        x, w, window_strides=(1,), padding=[(pad, pad)], rhs_dilation=(dilation,),
        dimension_numbers=("NCH", "OIH", "NCH"))
    return y + b[None, :, None]


def _conv_transpose1d_ref(x, w_pt, b, stride, padding):
    K = w_pt.shape[2]
    w = jnp.transpose(w_pt, (1, 0, 2))[:, :, ::-1]
    y = jax.lax.conv_general_dilated(
        x, w, window_strides=(1,), padding=[(K - 1 - padding,) * 2],
        lhs_dilation=(stride,), dimension_numbers=("NCH", "OIH", "NCH"))
    return y + b[None, :, None]


def generator_forward_ref(params, x, k_u, k_r, D_r):
    lrelu = lambda v: jnp.where(v >= 0, v, 0.1 * v)
    x = _conv1d_same_ref(x, params["start_w"], params["start_b"], 1)
    for i, blk in enumerate(params["middle"]):
        kul = k_u[i]
        x = _conv_transpose1d_ref(lrelu(x), blk["up_w"], blk["up_b"], kul // 2, kul // 4)
        for r in range(len(D_r)):
            y = x
            for j, d in enumerate(D_r[r]):
                cj = blk["mrf"][r][j]
                y = _conv1d_same_ref(lrelu(y), cj["w"], cj["b"], d)
            x = x + y
    return jnp.tanh(_conv1d_same_ref(lrelu(x), params["last_w"], params["last_b"], 1))


# ----------------------------------- main ---------------------------------------

if __name__ == "__main__":
    # Small synthetic config (HiFi-GAN-like, scaled down).
    in_channels = 8
    h_u = 32
    k_u = [4, 4]            # two upsampling blocks: 32->16->8 channels, 2x time each
    k_r = [3]
    D_r = [[1, 2]]          # one resblock per MRF with dilations 1, 2

    B, T = 2, 16
    key = jax.random.PRNGKey(0)
    key, kx = jax.random.split(key)
    x = jax.random.normal(kx, (B, in_channels, T), jnp.float32)

    params = init_generator_params(key, in_channels, h_u, k_u, k_r, D_r)

    fwd = jax.jit(functools.partial(generator_forward, k_u=k_u, k_r=k_r, D_r=D_r))
    out = jax.block_until_ready(fwd(params, x))

    expected_shape = (B, 1, T * (2 ** len(k_u)))
    assert out.shape == expected_shape, (out.shape, expected_shape)
    assert out.dtype == jnp.float32
    assert bool(jnp.all(jnp.isfinite(out)))
    assert bool(jnp.all(jnp.abs(out) <= 1.0))      # tanh output range

    # End-to-end check vs. pure-JAX f32 reference (Pallas path uses bf16 activations).
    ref = generator_forward_ref(params, x, k_u, k_r, D_r)
    err = float(jnp.max(jnp.abs(out - ref)))
    assert err < 5e-2, f"generator mismatch vs reference: {err}"

    # Direct check of the polyphase ConvTranspose1d path (same hyper-params as the model).
    kq1, kq2, kq3 = jax.random.split(jax.random.PRNGKey(2), 3)
    xu = jax.random.normal(kq1, (2, 32, 40), jnp.float32)
    wu = jax.random.normal(kq2, (32, 16, 4), jnp.float32) * 0.1
    bu = jax.random.normal(kq3, (16,), jnp.float32) * 0.1
    up = jax.jit(functools.partial(conv_transpose1d, stride=2, padding=1,
                                   out_dtype=jnp.float32))
    yu = jax.block_until_ready(up(xu, wu, bu))
    yu_ref = _conv_transpose1d_ref(xu, wu, bu, 2, 1)
    assert yu.shape == yu_ref.shape, (yu.shape, yu_ref.shape)
    erru = float(jnp.max(jnp.abs(yu - yu_ref)))
    scl = float(jnp.max(jnp.abs(yu_ref)))
    assert erru < 0.02 * scl + 1e-2, f"conv_transpose mismatch: {erru} (scale {scl})"

    # Exercise the non-stacked (K thin matmuls) path: K * C_in > 256.
    k1, k2, k3 = jax.random.split(jax.random.PRNGKey(1), 3)
    xt = jax.random.normal(k1, (1, 160, 256), jnp.float32) * 0.1
    wt = jax.random.normal(k2, (16, 160, 3), jnp.float32) * 0.05
    bt = jax.random.normal(k3, (16,), jnp.float32) * 0.01
    conv_thin = jax.jit(functools.partial(conv1d_same, dilation=2, out_dtype=jnp.float32))
    yt = jax.block_until_ready(conv_thin(xt, wt, bt))
    yr = _conv1d_same_ref(xt, wt, bt, 2)
    err2 = float(jnp.max(jnp.abs(yt - yr)))
    assert err2 < 2e-2, f"thin-matmul conv mismatch vs reference: {err2}"

    print("KERNEL_OK")
</pallas_src>

<mosaic_0001>
module attributes {stable_mosaic.version = 11 : i64} {
  func.func @_conv1d_kernel(%arg0: i32, %arg1: i32, %arg2: memref<1x32x128xbf16, #tpu.memory_space<vmem>>, %arg3: memref<1x32x128xbf16, #tpu.memory_space<vmem>>, %arg4: memref<32x96xbf16, #tpu.memory_space<vmem>>, %arg5: memref<32x1xf32, #tpu.memory_space<vmem>>, %arg6: memref<1x32x128xbf16, #tpu.memory_space<vmem>>) attributes {dimension_semantics = [#tpu.dimension_semantics<parallel>, #tpu.dimension_semantics<parallel>], iteration_bounds = array<i64: 2, 1>, scalar_prefetch = 0 : i64, scratch_operands = 0 : i64, tpu.core_type = #tpu.core_type<tc>, window_params = [{transform_indices = @transform_0, window_bounds = array<i64: 1, 32, 128>}, {transform_indices = @transform_1, window_bounds = array<i64: 1, 32, 128>}, {pipeline_mode = #tpu.pipeline_mode<synchronous>, transform_indices = @transform_2, window_bounds = array<i64: 32, 96>}, {pipeline_mode = #tpu.pipeline_mode<synchronous>, transform_indices = @transform_3, window_bounds = array<i64: 32, 1>}, {transform_indices = @transform_4, window_bounds = array<i64: 1, 32, 128>}]} {
    %c0 = arith.constant 0 : index
    %c0_0 = arith.constant 0 : index
    %c0_1 = arith.constant 0 : index
    %0 = vector.load %arg2[%c0, %c0_0, %c0_1] : memref<1x32x128xbf16, #tpu.memory_space<vmem>>, vector<1x32x128xbf16>
    %1 = vector.shape_cast %0 : vector<1x32x128xbf16> to vector<32x128xbf16>
    %c0_2 = arith.constant 0 : index
    %c0_3 = arith.constant 0 : index
    %c0_4 = arith.constant 0 : index
    %2 = vector.load %arg3[%c0_2, %c0_3, %c0_4] : memref<1x32x128xbf16, #tpu.memory_space<vmem>>, vector<1x32x128xbf16>
    %3 = vector.shape_cast %2 : vector<1x32x128xbf16> to vector<32x128xbf16>
    %4 = tpu.concatenate %1, %3 in 1 : vector<32x128xbf16>, vector<32x128xbf16> -> vector<32x256xbf16>
    %cst = arith.constant 0.000000e+00 : bf16
    %5 = vector.broadcast %cst : bf16 to vector<32x256xbf16>
    %6 = arith.cmpf oge, %4, %5 : vector<32x256xbf16>
    %cst_5 = arith.constant 1.000980e-01 : bf16
    %7 = vector.broadcast %cst_5 : bf16 to vector<32x256xbf16>
    %8 = arith.mulf %7, %4 : vector<32x256xbf16>
    %9 = arith.select %6, %4, %8 : vector<32x256xi1>, vector<32x256xbf16>
    %10 = vector.extract_strided_slice %9 {offsets = [0, 0], sizes = [32, 128], strides = [1, 1]} : vector<32x256xbf16> to vector<32x128xbf16>
    %11 = vector.extract_strided_slice %9 {offsets = [0, 1], sizes = [32, 128], strides = [1, 1]} : vector<32x256xbf16> to vector<32x128xbf16>
    %12 = vector.extract_strided_slice %9 {offsets = [0, 2], sizes = [32, 128], strides = [1, 1]} : vector<32x256xbf16> to vector<32x128xbf16>
    %13 = tpu.concatenate %10, %11, %12 in 0 : vector<32x128xbf16>, vector<32x128xbf16>, vector<32x128xbf16> -> vector<96x128xbf16>
    %c0_6 = arith.constant 0 : index
    %c0_7 = arith.constant 0 : index
    %14 = vector.load %arg4[%c0_6, %c0_7] : memref<32x96xbf16, #tpu.memory_space<vmem>>, vector<32x96xbf16>
    %cst_8 = arith.constant dense<0.000000e+00> : vector<32x128xf32>
    %15 = tpu.matmul %14, %13, %cst_8 {dimension_numbers = #tpu.dot_dimension_numbers<[1], [0], [0], [1], [0, 0, 1, 1], [], []>} : vector<32x96xbf16>, vector<96x128xbf16>, vector<32x128xf32> -> vector<32x128xf32>
    %c0_9 = arith.constant 0 : index
    %c0_10 = arith.constant 0 : index
    %16 = vector.load %arg5[%c0_9, %c0_10] : memref<32x1xf32, #tpu.memory_space<vmem>>, vector<32x1xf32>
    %17 = vector.broadcast %16 : vector<32x1xf32> to vector<32x128xf32>
    %18 = arith.addf %15, %17 : vector<32x128xf32>
    %19 = arith.truncf %18 : vector<32x128xf32> to vector<32x128xbf16>
    %c0_11 = arith.constant 0 : index
    %c0_12 = arith.constant 0 : index
    %c0_13 = arith.constant 0 : index
    %20 = vector.load %arg6[%c0_11, %c0_12, %c0_13] : memref<1x32x128xbf16, #tpu.memory_space<vmem>>, vector<1x32x128xbf16>
    %21 = vector.shape_cast %20 : vector<1x32x128xbf16> to vector<32x128xbf16>
    %22 = vector.shape_cast %19 : vector<32x128xbf16> to vector<1x32x128xbf16>
    tpu.vector_store %arg6[%c0_11, %c0_12, %c0_13], %22 {strides = array<i32>} : memref<1x32x128xbf16, #tpu.memory_space<vmem>>, vector<1x32x128xbf16>,
    return
  }
  func.func @transform_0(%arg0: i32, %arg1: i32) -> (i32, i32, i32) {
    %c0_i32 = arith.constant 0 : i32
    %c0_i32_0 = arith.constant 0 : i32
    return %arg0, %c0_i32, %arg1 : i32, i32, i32
  }
  func.func @transform_1(%arg0: i32, %arg1: i32) -> (i32, i32, i32) {
    %c1_i32 = arith.constant 1 : i32
    %0 = arith.addi %arg1, %c1_i32 : i32
    %c1_i32_0 = arith.constant 1 : i32
    %1 = arith.muli %0, %c1_i32_0 : i32
    %c0_i32 = arith.constant 0 : i32
    %c0_i32_1 = arith.constant 0 : i32
    return %arg0, %c0_i32, %1 : i32, i32, i32
  }
  func.func @transform_2(%arg0: i32, %arg1: i32) -> (i32, i32) {
    %c0_i32 = arith.constant 0 : i32
    %c0_i32_0 = arith.constant 0 : i32
    %c0_i32_1 = arith.constant 0 : i32
    return %c0_i32, %c0_i32_0 : i32, i32
  }
  func.func @transform_3(%arg0: i32, %arg1: i32) -> (i32, i32) {
    %c0_i32 = arith.constant 0 : i32
    %c0_i32_0 = arith.constant 0 : i32
    %c0_i32_1 = arith.constant 0 : i32
    return %c0_i32, %c0_i32_0 : i32, i32
  }
  func.func @transform_4(%arg0: i32, %arg1: i32) -> (i32, i32, i32) {
    %c0_i32 = arith.constant 0 : i32
    %c0_i32_0 = arith.constant 0 : i32
    return %arg0, %c0_i32, %arg1 : i32, i32, i32
  }
}

module attributes {stable_mosaic.version = 11 : i64} {
  func.func @_conv1d_kernel(%arg0: i32, %arg1: i32, %arg2: memref<1x16x128xbf16, #tpu.memory_space<vmem>>, %arg3: memref<1x16x128xbf16, #tpu.memory_space<vmem>>, %arg4: memref<32x112xbf16, #tpu.memory_space<vmem>>, %arg5: memref<32x1xf32, #tpu.memory_space<vmem>>, %arg6: memref<1x32x128xbf16, #tpu.memory_space<vmem>>) attributes {dimension_semantics = [#tpu.dimension_semantics<parallel>, #tpu.dimension_semantics<parallel>], iteration_bounds = array<i64: 2, 1>, scalar_prefetch = 0 : i64, scratch_operands = 0 : i64, tpu.core_type = #tpu.core_type<tc>, window_params = [{transform_indices = @transform_0, window_bounds = array<i64: 1, 16, 128>}, {transform_indices = @transform_1, window_bounds = array<i64: 1, 16, 128>}, {pipeline_mode = #tpu.pipeline_mode<synchronous>, transform_indices = @transform_2, window_bounds = array<i64: 32, 112>}, {pipeline_mode = #tpu.pipeline_mode<synchronous>, transform_indices = @transform_3, window_bounds = array<i64: 32, 1>}, {transform_indices = @transform_4, window_bounds = array<i64: 1, 32, 128>}]} {
    %c0 = arith.constant 0 : index
    %c0_0 = arith.constant 0 : index
    %c0_1 = arith.constant 0 : index
    %0 = vector.load %arg2[%c0, %c0_0, %c0_1] : memref<1x16x128xbf16, #tpu.memory_space<vmem>>, vector<1x16x128xbf16>
    %1 = vector.shape_cast %0 : vector<1x16x128xbf16> to vector<16x128xbf16>
    %c0_2 = arith.constant 0 : index
    %c0_3 = arith.constant 0 : index
    %c0_4 = arith.constant 0 : index
    %2 = vector.load %arg3[%c0_2, %c0_3, %c0_4] : memref<1x16x128xbf16, #tpu.memory_space<vmem>>, vector<1x16x128xbf16>
    %3 = vector.shape_cast %2 : vector<1x16x128xbf16> to vector<16x128xbf16>
    %4 = tpu.concatenate %1, %3 in 1 : vector<16x128xbf16>, vector<16x128xbf16> -> vector<16x256xbf16>
    %5 = vector.extract_strided_slice %4 {offsets = [0, 0], sizes = [16, 128], strides = [1, 1]} : vector<16x256xbf16> to vector<16x128xbf16>
    %6 = vector.extract_strided_slice %4 {offsets = [0, 1], sizes = [16, 128], strides = [1, 1]} : vector<16x256xbf16> to vector<16x128xbf16>
    %7 = vector.extract_strided_slice %4 {offsets = [0, 2], sizes = [16, 128], strides = [1, 1]} : vector<16x256xbf16> to vector<16x128xbf16>
    %8 = vector.extract_strided_slice %4 {offsets = [0, 3], sizes = [16, 128], strides = [1, 1]} : vector<16x256xbf16> to vector<16x128xbf16>
    %9 = vector.extract_strided_slice %4 {offsets = [0, 4], sizes = [16, 128], strides = [1, 1]} : vector<16x256xbf16> to vector<16x128xbf16>
    %10 = vector.extract_strided_slice %4 {offsets = [0, 5], sizes = [16, 128], strides = [1, 1]} : vector<16x256xbf16> to vector<16x128xbf16>
    %11 = vector.extract_strided_slice %4 {offsets = [0, 6], sizes = [16, 128], strides = [1, 1]} : vector<16x256xbf16> to vector<16x128xbf16>
    %12 = tpu.concatenate %5, %6, %7, %8, %9, %10, %11 in 0 : vector<16x128xbf16>, vector<16x128xbf16>, vector<16x128xbf16>, vector<16x128xbf16>, vector<16x128xbf16>, vector<16x128xbf16>, vector<16x128xbf16> -> vector<112x128xbf16>
    %c0_5 = arith.constant 0 : index
    %c0_6 = arith.constant 0 : index
    %13 = vector.load %arg4[%c0_5, %c0_6] : memref<32x112xbf16, #tpu.memory_space<vmem>>, vector<32x112xbf16>
    %cst = arith.constant dense<0.000000e+00> : vector<32x128xf32>
    %14 = tpu.matmul %13, %12, %cst {dimension_numbers = #tpu.dot_dimension_numbers<[1], [0], [0], [1], [0, 0, 1, 1], [], []>} : vector<32x112xbf16>, vector<112x128xbf16>, vector<32x128xf32> -> vector<32x128xf32>
    %c0_7 = arith.constant 0 : index
    %c0_8 = arith.constant 0 : index
    %15 = vector.load %arg5[%c0_7, %c0_8] : memref<32x1xf32, #tpu.memory_space<vmem>>, vector<32x1xf32>
    %16 = vector.broadcast %15 : vector<32x1xf32> to vector<32x128xf32>
    %17 = arith.addf %14, %16 : vector<32x128xf32>
    %18 = arith.truncf %17 : vector<32x128xf32> to vector<32x128xbf16>
    %c0_9 = arith.constant 0 : index
    %c0_10 = arith.constant 0 : index
    %c0_11 = arith.constant 0 : index
    %19 = vector.load %arg6[%c0_9, %c0_10, %c0_11] : memref<1x32x128xbf16, #tpu.memory_space<vmem>>, vector<1x32x128xbf16>
    %20 = vector.shape_cast %19 : vector<1x32x128xbf16> to vector<32x128xbf16>
    %21 = vector.shape_cast %18 : vector<32x128xbf16> to vector<1x32x128xbf16>
    tpu.vector_store %arg6[%c0_9, %c0_10, %c0_11], %21 {strides = array<i32>} : memref<1x32x128xbf16, #tpu.memory_space<vmem>>, vector<1x32x128xbf16>,
    return
  }
  func.func @transform_0(%arg0: i32, %arg1: i32) -> (i32, i32, i32) {
    %c0_i32 = arith.constant 0 : i32
    %c0_i32_0 = arith.constant 0 : i32
    return %arg0, %c0_i32, %arg1 : i32, i32, i32
  }
  func.func @transform_1(%arg0: i32, %arg1: i32) -> (i32, i32, i32) {
    %c1_i32 = arith.constant 1 : i32
    %0 = arith.addi %arg1, %c1_i32 : i32
    %c1_i32_0 = arith.constant 1 : i32
    %1 = arith.muli %0, %c1_i32_0 : i32
    %c0_i32 = arith.constant 0 : i32
    %c0_i32_1 = arith.constant 0 : i32
    return %arg0, %c0_i32, %1 : i32, i32, i32
  }
  func.func @transform_2(%arg0: i32, %arg1: i32) -> (i32, i32) {
    %c0_i32 = arith.constant 0 : i32
    %c0_i32_0 = arith.constant 0 : i32
    %c0_i32_1 = arith.constant 0 : i32
    return %c0_i32, %c0_i32_0 : i32, i32
  }
  func.func @transform_3(%arg0: i32, %arg1: i32) -> (i32, i32) {
    %c0_i32 = arith.constant 0 : i32
    %c0_i32_0 = arith.constant 0 : i32
    %c0_i32_1 = arith.constant 0 : i32
    return %c0_i32, %c0_i32_0 : i32, i32
  }
  func.func @transform_4(%arg0: i32, %arg1: i32) -> (i32, i32, i32) {
    %c0_i32 = arith.constant 0 : i32
    %c0_i32_0 = arith.constant 0 : i32
    return %arg0, %c0_i32, %arg1 : i32, i32, i32
  }
}

module attributes {stable_mosaic.version = 11 : i64} {
  func.func @_conv1d_kernel(%arg0: i32, %arg1: i32, %arg2: memref<1x16x128xbf16, #tpu.memory_space<vmem>>, %arg3: memref<1x16x128xbf16, #tpu.memory_space<vmem>>, %arg4: memref<16x48xbf16, #tpu.memory_space<vmem>>, %arg5: memref<16x1xf32, #tpu.memory_space<vmem>>, %arg6: memref<1x16x128xbf16, #tpu.memory_space<vmem>>) attributes {dimension_semantics = [#tpu.dimension_semantics<parallel>, #tpu.dimension_semantics<parallel>], iteration_bounds = array<i64: 2, 1>, scalar_prefetch = 0 : i64, scratch_operands = 0 : i64, tpu.core_type = #tpu.core_type<tc>, window_params = [{transform_indices = @transform_0, window_bounds = array<i64: 1, 16, 128>}, {transform_indices = @transform_1, window_bounds = array<i64: 1, 16, 128>}, {pipeline_mode = #tpu.pipeline_mode<synchronous>, transform_indices = @transform_2, window_bounds = array<i64: 16, 48>}, {pipeline_mode = #tpu.pipeline_mode<synchronous>, transform_indices = @transform_3, window_bounds = array<i64: 16, 1>}, {transform_indices = @transform_4, window_bounds = array<i64: 1, 16, 128>}]} {
    %c0 = arith.constant 0 : index
    %c0_0 = arith.constant 0 : index
    %c0_1 = arith.constant 0 : index
    %0 = vector.load %arg2[%c0, %c0_0, %c0_1] : memref<1x16x128xbf16, #tpu.memory_space<vmem>>, vector<1x16x128xbf16>
    %1 = vector.shape_cast %0 : vector<1x16x128xbf16> to vector<16x128xbf16>
    %c0_2 = arith.constant 0 : index
    %c0_3 = arith.constant 0 : index
    %c0_4 = arith.constant 0 : index
    %2 = vector.load %arg3[%c0_2, %c0_3, %c0_4] : memref<1x16x128xbf16, #tpu.memory_space<vmem>>, vector<1x16x128xbf16>
    %3 = vector.shape_cast %2 : vector<1x16x128xbf16> to vector<16x128xbf16>
    %4 = tpu.concatenate %1, %3 in 1 : vector<16x128xbf16>, vector<16x128xbf16> -> vector<16x256xbf16>
    %cst = arith.constant 0.000000e+00 : bf16
    %5 = vector.broadcast %cst : bf16 to vector<16x256xbf16>
    %6 = arith.cmpf oge, %4, %5 : vector<16x256xbf16>
    %cst_5 = arith.constant 1.000980e-01 : bf16
    %7 = vector.broadcast %cst_5 : bf16 to vector<16x256xbf16>
    %8 = arith.mulf %7, %4 : vector<16x256xbf16>
    %9 = arith.select %6, %4, %8 : vector<16x256xi1>, vector<16x256xbf16>
    %10 = vector.extract_strided_slice %9 {offsets = [0, 0], sizes = [16, 128], strides = [1, 1]} : vector<16x256xbf16> to vector<16x128xbf16>
    %11 = vector.extract_strided_slice %9 {offsets = [0, 1], sizes = [16, 128], strides = [1, 1]} : vector<16x256xbf16> to vector<16x128xbf16>
    %12 = vector.extract_strided_slice %9 {offsets = [0, 2], sizes = [16, 128], strides = [1, 1]} : vector<16x256xbf16> to vector<16x128xbf16>
    %13 = tpu.concatenate %10, %11, %12 in 0 : vector<16x128xbf16>, vector<16x128xbf16>, vector<16x128xbf16> -> vector<48x128xbf16>
    %c0_6 = arith.constant 0 : index
    %c0_7 = arith.constant 0 : index
    %14 = vector.load %arg4[%c0_6, %c0_7] : memref<16x48xbf16, #tpu.memory_space<vmem>>, vector<16x48xbf16>
    %cst_8 = arith.constant dense<0.000000e+00> : vector<16x128xf32>
    %15 = tpu.matmul %14, %13, %cst_8 {dimension_numbers = #tpu.dot_dimension_numbers<[1], [0], [0], [1], [0, 0, 1, 1], [], []>} : vector<16x48xbf16>, vector<48x128xbf16>, vector<16x128xf32> -> vector<16x128xf32>
    %c0_9 = arith.constant 0 : index
    %c0_10 = arith.constant 0 : index
    %16 = vector.load %arg5[%c0_9, %c0_10] : memref<16x1xf32, #tpu.memory_space<vmem>>, vector<16x1xf32>
    %17 = vector.broadcast %16 : vector<16x1xf32> to vector<16x128xf32>
    %18 = arith.addf %15, %17 : vector<16x128xf32>
    %19 = arith.truncf %18 : vector<16x128xf32> to vector<16x128xbf16>
    %c0_11 = arith.constant 0 : index
    %c0_12 = arith.constant 0 : index
    %c0_13 = arith.constant 0 : index
    %20 = vector.load %arg6[%c0_11, %c0_12, %c0_13] : memref<1x16x128xbf16, #tpu.memory_space<vmem>>, vector<1x16x128xbf16>
    %21 = vector.shape_cast %20 : vector<1x16x128xbf16> to vector<16x128xbf16>
    %22 = vector.shape_cast %19 : vector<16x128xbf16> to vector<1x16x128xbf16>
    tpu.vector_store %arg6[%c0_11, %c0_12, %c0_13], %22 {strides = array<i32>} : memref<1x16x128xbf16, #tpu.memory_space<vmem>>, vector<1x16x128xbf16>,
    return
  }
  func.func @transform_0(%arg0: i32, %arg1: i32) -> (i32, i32, i32) {
    %c0_i32 = arith.constant 0 : i32
    %c0_i32_0 = arith.constant 0 : i32
    return %arg0, %c0_i32, %arg1 : i32, i32, i32
  }
  func.func @transform_1(%arg0: i32, %arg1: i32) -> (i32, i32, i32) {
    %c1_i32 = arith.constant 1 : i32
    %0 = arith.addi %arg1, %c1_i32 : i32
    %c1_i32_0 = arith.constant 1 : i32
    %1 = arith.muli %0, %c1_i32_0 : i32
    %c0_i32 = arith.constant 0 : i32
    %c0_i32_1 = arith.constant 0 : i32
    return %arg0, %c0_i32, %1 : i32, i32, i32
  }
  func.func @transform_2(%arg0: i32, %arg1: i32) -> (i32, i32) {
    %c0_i32 = arith.constant 0 : i32
    %c0_i32_0 = arith.constant 0 : i32
    %c0_i32_1 = arith.constant 0 : i32
    return %c0_i32, %c0_i32_0 : i32, i32
  }
  func.func @transform_3(%arg0: i32, %arg1: i32) -> (i32, i32) {
    %c0_i32 = arith.constant 0 : i32
    %c0_i32_0 = arith.constant 0 : i32
    %c0_i32_1 = arith.constant 0 : i32
    return %c0_i32, %c0_i32_0 : i32, i32
  }
  func.func @transform_4(%arg0: i32, %arg1: i32) -> (i32, i32, i32) {
    %c0_i32 = arith.constant 0 : i32
    %c0_i32_0 = arith.constant 0 : i32
    return %arg0, %c0_i32, %arg1 : i32, i32, i32
  }
}

module attributes {stable_mosaic.version = 11 : i64} {
  func.func @_conv1d_kernel(%arg0: i32, %arg1: i32, %arg2: memref<1x16x128xbf16, #tpu.memory_space<vmem>>, %arg3: memref<1x16x128xbf16, #tpu.memory_space<vmem>>, %arg4: memref<16x48xbf16, #tpu.memory_space<vmem>>, %arg5: memref<16x1xf32, #tpu.memory_space<vmem>>, %arg6: memref<1x16x128xbf16, #tpu.memory_space<vmem>>, %arg7: memref<1x16x128xbf16, #tpu.memory_space<vmem>>) attributes {dimension_semantics = [#tpu.dimension_semantics<parallel>, #tpu.dimension_semantics<parallel>], iteration_bounds = array<i64: 2, 1>, scalar_prefetch = 0 : i64, scratch_operands = 0 : i64, tpu.core_type = #tpu.core_type<tc>, window_params = [{transform_indices = @transform_0, window_bounds = array<i64: 1, 16, 128>}, {transform_indices = @transform_1, window_bounds = array<i64: 1, 16, 128>}, {pipeline_mode = #tpu.pipeline_mode<synchronous>, transform_indices = @transform_2, window_bounds = array<i64: 16, 48>}, {pipeline_mode = #tpu.pipeline_mode<synchronous>, transform_indices = @transform_3, window_bounds = array<i64: 16, 1>}, {transform_indices = @transform_4, window_bounds = array<i64: 1, 16, 128>}, {transform_indices = @transform_5, window_bounds = array<i64: 1, 16, 128>}]} {
    %c0 = arith.constant 0 : index
    %c0_0 = arith.constant 0 : index
    %c0_1 = arith.constant 0 : index
    %0 = vector.load %arg2[%c0, %c0_0, %c0_1] : memref<1x16x128xbf16, #tpu.memory_space<vmem>>, vector<1x16x128xbf16>
    %1 = vector.shape_cast %0 : vector<1x16x128xbf16> to vector<16x128xbf16>
    %c0_2 = arith.constant 0 : index
    %c0_3 = arith.constant 0 : index
    %c0_4 = arith.constant 0 : index
    %2 = vector.load %arg3[%c0_2, %c0_3, %c0_4] : memref<1x16x128xbf16, #tpu.memory_space<vmem>>, vector<1x16x128xbf16>
    %3 = vector.shape_cast %2 : vector<1x16x128xbf16> to vector<16x128xbf16>
    %4 = tpu.concatenate %1, %3 in 1 : vector<16x128xbf16>, vector<16x128xbf16> -> vector<16x256xbf16>
    %cst = arith.constant 0.000000e+00 : bf16
    %5 = vector.broadcast %cst : bf16 to vector<16x256xbf16>
    %6 = arith.cmpf oge, %4, %5 : vector<16x256xbf16>
    %cst_5 = arith.constant 1.000980e-01 : bf16
    %7 = vector.broadcast %cst_5 : bf16 to vector<16x256xbf16>
    %8 = arith.mulf %7, %4 : vector<16x256xbf16>
    %9 = arith.select %6, %4, %8 : vector<16x256xi1>, vector<16x256xbf16>
    %10 = vector.extract_strided_slice %9 {offsets = [0, 0], sizes = [16, 128], strides = [1, 1]} : vector<16x256xbf16> to vector<16x128xbf16>
    %11 = vector.extract_strided_slice %9 {offsets = [0, 2], sizes = [16, 128], strides = [1, 1]} : vector<16x256xbf16> to vector<16x128xbf16>
    %12 = vector.extract_strided_slice %9 {offsets = [0, 4], sizes = [16, 128], strides = [1, 1]} : vector<16x256xbf16> to vector<16x128xbf16>
    %13 = tpu.concatenate %10, %11, %12 in 0 : vector<16x128xbf16>, vector<16x128xbf16>, vector<16x128xbf16> -> vector<48x128xbf16>
    %c0_6 = arith.constant 0 : index
    %c0_7 = arith.constant 0 : index
    %14 = vector.load %arg4[%c0_6, %c0_7] : memref<16x48xbf16, #tpu.memory_space<vmem>>, vector<16x48xbf16>
    %cst_8 = arith.constant dense<0.000000e+00> : vector<16x128xf32>
    %15 = tpu.matmul %14, %13, %cst_8 {dimension_numbers = #tpu.dot_dimension_numbers<[1], [0], [0], [1], [0, 0, 1, 1], [], []>} : vector<16x48xbf16>, vector<48x128xbf16>, vector<16x128xf32> -> vector<16x128xf32>
    %c0_9 = arith.constant 0 : index
    %c0_10 = arith.constant 0 : index
    %16 = vector.load %arg5[%c0_9, %c0_10] : memref<16x1xf32, #tpu.memory_space<vmem>>, vector<16x1xf32>
    %17 = vector.broadcast %16 : vector<16x1xf32> to vector<16x128xf32>
    %18 = arith.addf %15, %17 : vector<16x128xf32>
    %c0_11 = arith.constant 0 : index
    %c0_12 = arith.constant 0 : index
    %c0_13 = arith.constant 0 : index
    %19 = vector.load %arg6[%c0_11, %c0_12, %c0_13] : memref<1x16x128xbf16, #tpu.memory_space<vmem>>, vector<1x16x128xbf16>
    %20 = vector.shape_cast %19 : vector<1x16x128xbf16> to vector<16x128xbf16>
    %21 = arith.extf %20 : vector<16x128xbf16> to vector<16x128xf32>
    %22 = arith.addf %18, %21 : vector<16x128xf32>
    %23 = arith.truncf %22 : vector<16x128xf32> to vector<16x128xbf16>
    %c0_14 = arith.constant 0 : index
    %c0_15 = arith.constant 0 : index
    %c0_16 = arith.constant 0 : index
    %24 = vector.load %arg7[%c0_14, %c0_15, %c0_16] : memref<1x16x128xbf16, #tpu.memory_space<vmem>>, vector<1x16x128xbf16>
    %25 = vector.shape_cast %24 : vector<1x16x128xbf16> to vector<16x128xbf16>
    %26 = vector.shape_cast %23 : vector<16x128xbf16> to vector<1x16x128xbf16>
    tpu.vector_store %arg7[%c0_14, %c0_15, %c0_16], %26 {strides = array<i32>} : memref<1x16x128xbf16, #tpu.memory_space<vmem>>, vector<1x16x128xbf16>,
    return
  }
  func.func @transform_0(%arg0: i32, %arg1: i32) -> (i32, i32, i32) {
    %c0_i32 = arith.constant 0 : i32
    %c0_i32_0 = arith.constant 0 : i32
    return %arg0, %c0_i32, %arg1 : i32, i32, i32
  }
  func.func @transform_1(%arg0: i32, %arg1: i32) -> (i32, i32, i32) {
    %c1_i32 = arith.constant 1 : i32
    %0 = arith.addi %arg1, %c1_i32 : i32
    %c1_i32_0 = arith.constant 1 : i32
    %1 = arith.muli %0, %c1_i32_0 : i32
    %c0_i32 = arith.constant 0 : i32
    %c0_i32_1 = arith.constant 0 : i32
    return %arg0, %c0_i32, %1 : i32, i32, i32
  }
  func.func @transform_2(%arg0: i32, %arg1: i32) -> (i32, i32) {
    %c0_i32 = arith.constant 0 : i32
    %c0_i32_0 = arith.constant 0 : i32
    %c0_i32_1 = arith.constant 0 : i32
    return %c0_i32, %c0_i32_0 : i32, i32
  }
  func.func @transform_3(%arg0: i32, %arg1: i32) -> (i32, i32) {
    %c0_i32 = arith.constant 0 : i32
    %c0_i32_0 = arith.constant 0 : i32
    %c0_i32_1 = arith.constant 0 : i32
    return %c0_i32, %c0_i32_0 : i32, i32
  }
  func.func @transform_4(%arg0: i32, %arg1: i32) -> (i32, i32, i32) {
    %c0_i32 = arith.constant 0 : i32
    %c0_i32_0 = arith.constant 0 : i32
    return %arg0, %c0_i32, %arg1 : i32, i32, i32
  }
  func.func @transform_5(%arg0: i32, %arg1: i32) -> (i32, i32, i32) {
    %c0_i32 = arith.constant 0 : i32
    %c0_i32_0 = arith.constant 0 : i32
    return %arg0, %c0_i32, %arg1 : i32, i32, i32
  }
}

module attributes {stable_mosaic.version = 11 : i64} {
  func.func @_conv1d_kernel(%arg0: i32, %arg1: i32, %arg2: memref<1x16x128xbf16, #tpu.memory_space<vmem>>, %arg3: memref<1x16x128xbf16, #tpu.memory_space<vmem>>, %arg4: memref<8x48xbf16, #tpu.memory_space<vmem>>, %arg5: memref<8x1xf32, #tpu.memory_space<vmem>>, %arg6: memref<1x8x128xbf16, #tpu.memory_space<vmem>>, %arg7: memref<1x8x128xbf16, #tpu.memory_space<vmem>>) attributes {dimension_semantics = [#tpu.dimension_semantics<parallel>, #tpu.dimension_semantics<parallel>], iteration_bounds = array<i64: 2, 1>, scalar_prefetch = 0 : i64, scratch_operands = 0 : i64, tpu.core_type = #tpu.core_type<tc>, window_params = [{transform_indices = @transform_0, window_bounds = array<i64: 1, 16, 128>}, {transform_indices = @transform_1, window_bounds = array<i64: 1, 16, 128>}, {pipeline_mode = #tpu.pipeline_mode<synchronous>, transform_indices = @transform_2, window_bounds = array<i64: 8, 48>}, {pipeline_mode = #tpu.pipeline_mode<synchronous>, transform_indices = @transform_3, window_bounds = array<i64: 8, 1>}, {transform_indices = @transform_4, window_bounds = array<i64: 1, 8, 128>}, {transform_indices = @transform_5, window_bounds = array<i64: 1, 8, 128>}]} {
    %c0 = arith.constant 0 : index
    %c0_0 = arith.constant 0 : index
    %c0_1 = arith.constant 0 : index
    %0 = vector.load %arg2[%c0, %c0_0, %c0_1] : memref<1x16x128xbf16, #tpu.memory_space<vmem>>, vector<1x16x128xbf16>
    %1 = vector.shape_cast %0 : vector<1x16x128xbf16> to vector<16x128xbf16>
    %c0_2 = arith.constant 0 : index
    %c0_3 = arith.constant 0 : index
    %c0_4 = arith.constant 0 : index
    %2 = vector.load %arg3[%c0_2, %c0_3, %c0_4] : memref<1x16x128xbf16, #tpu.memory_space<vmem>>, vector<1x16x128xbf16>
    %3 = vector.shape_cast %2 : vector<1x16x128xbf16> to vector<16x128xbf16>
    %4 = tpu.concatenate %1, %3 in 1 : vector<16x128xbf16>, vector<16x128xbf16> -> vector<16x256xbf16>
    %cst = arith.constant 0.000000e+00 : bf16
    %5 = vector.broadcast %cst : bf16 to vector<16x256xbf16>
    %6 = arith.cmpf oge, %4, %5 : vector<16x256xbf16>
    %cst_5 = arith.constant 1.000980e-01 : bf16
    %7 = vector.broadcast %cst_5 : bf16 to vector<16x256xbf16>
    %8 = arith.mulf %7, %4 : vector<16x256xbf16>
    %9 = arith.select %6, %4, %8 : vector<16x256xi1>, vector<16x256xbf16>
    %10 = vector.extract_strided_slice %9 {offsets = [0, 0], sizes = [16, 128], strides = [1, 1]} : vector<16x256xbf16> to vector<16x128xbf16>
    %11 = vector.extract_strided_slice %9 {offsets = [0, 2], sizes = [16, 128], strides = [1, 1]} : vector<16x256xbf16> to vector<16x128xbf16>
    %12 = vector.extract_strided_slice %9 {offsets = [0, 4], sizes = [16, 128], strides = [1, 1]} : vector<16x256xbf16> to vector<16x128xbf16>
    %13 = tpu.concatenate %10, %11, %12 in 0 : vector<16x128xbf16>, vector<16x128xbf16>, vector<16x128xbf16> -> vector<48x128xbf16>
    %c0_6 = arith.constant 0 : index
    %c0_7 = arith.constant 0 : index
    %14 = vector.load %arg4[%c0_6, %c0_7] : memref<8x48xbf16, #tpu.memory_space<vmem>>, vector<8x48xbf16>
    %cst_8 = arith.constant dense<0.000000e+00> : vector<8x128xf32>
    %15 = tpu.matmul %14, %13, %cst_8 {dimension_numbers = #tpu.dot_dimension_numbers<[1], [0], [0], [1], [0, 0, 1, 1], [], []>} : vector<8x48xbf16>, vector<48x128xbf16>, vector<8x128xf32> -> vector<8x128xf32>
    %c0_9 = arith.constant 0 : index
    %c0_10 = arith.constant 0 : index
    %16 = vector.load %arg5[%c0_9, %c0_10] : memref<8x1xf32, #tpu.memory_space<vmem>>, vector<8x1xf32>
    %17 = vector.broadcast %16 : vector<8x1xf32> to vector<8x128xf32>
    %18 = arith.addf %15, %17 : vector<8x128xf32>
    %c0_11 = arith.constant 0 : index
    %c0_12 = arith.constant 0 : index
    %c0_13 = arith.constant 0 : index
    %19 = vector.load %arg6[%c0_11, %c0_12, %c0_13] : memref<1x8x128xbf16, #tpu.memory_space<vmem>>, vector<1x8x128xbf16>
    %20 = vector.shape_cast %19 : vector<1x8x128xbf16> to vector<8x128xbf16>
    %21 = arith.extf %20 : vector<8x128xbf16> to vector<8x128xf32>
    %22 = arith.addf %18, %21 : vector<8x128xf32>
    %23 = arith.truncf %22 : vector<8x128xf32> to vector<8x128xbf16>
    %c0_14 = arith.constant 0 : index
    %c0_15 = arith.constant 0 : index
    %c0_16 = arith.constant 0 : index
    %24 = vector.load %arg7[%c0_14, %c0_15, %c0_16] : memref<1x8x128xbf16, #tpu.memory_space<vmem>>, vector<1x8x128xbf16>
    %25 = vector.shape_cast %24 : vector<1x8x128xbf16> to vector<8x128xbf16>
    %26 = vector.shape_cast %23 : vector<8x128xbf16> to vector<1x8x128xbf16>
    tpu.vector_store %arg7[%c0_14, %c0_15, %c0_16], %26 {strides = array<i32>} : memref<1x8x128xbf16, #tpu.memory_space<vmem>>, vector<1x8x128xbf16>,
    return
  }
  func.func @transform_0(%arg0: i32, %arg1: i32) -> (i32, i32, i32) {
    %c0_i32 = arith.constant 0 : i32
    %c0_i32_0 = arith.constant 0 : i32
    return %arg0, %c0_i32, %arg1 : i32, i32, i32
  }
  func.func @transform_1(%arg0: i32, %arg1: i32) -> (i32, i32, i32) {
    %c1_i32 = arith.constant 1 : i32
    %0 = arith.addi %arg1, %c1_i32 : i32
    %c1_i32_0 = arith.constant 1 : i32
    %1 = arith.muli %0, %c1_i32_0 : i32
    %c0_i32 = arith.constant 0 : i32
    %c0_i32_1 = arith.constant 0 : i32
    return %arg0, %c0_i32, %1 : i32, i32, i32
  }
  func.func @transform_2(%arg0: i32, %arg1: i32) -> (i32, i32) {
    %c0_i32 = arith.constant 0 : i32
    %c0_i32_0 = arith.constant 0 : i32
    %c0_i32_1 = arith.constant 0 : i32
    return %c0_i32, %c0_i32_0 : i32, i32
  }
  func.func @transform_3(%arg0: i32, %arg1: i32) -> (i32, i32) {
    %c0_i32 = arith.constant 0 : i32
    %c0_i32_0 = arith.constant 0 : i32
    %c0_i32_1 = arith.constant 0 : i32
    return %c0_i32, %c0_i32_0 : i32, i32
  }
  func.func @transform_4(%arg0: i32, %arg1: i32) -> (i32, i32, i32) {
    %c0_i32 = arith.constant 0 : i32
    %c0_i32_0 = arith.constant 0 : i32
    return %arg0, %c0_i32, %arg1 : i32, i32, i32
  }
  func.func @transform_5(%arg0: i32, %arg1: i32) -> (i32, i32, i32) {
    %c0_i32 = arith.constant 0 : i32
    %c0_i32_0 = arith.constant 0 : i32
    return %arg0, %c0_i32, %arg1 : i32, i32, i32
  }
}

module attributes {stable_mosaic.version = 11 : i64} {
  func.func @_conv1d_kernel(%arg0: i32, %arg1: i32, %arg2: memref<1x16x128xbf16, #tpu.memory_space<vmem>>, %arg3: memref<1x16x128xbf16, #tpu.memory_space<vmem>>, %arg4: memref<8x48xbf16, #tpu.memory_space<vmem>>, %arg5: memref<8x1xf32, #tpu.memory_space<vmem>>, %arg6: memref<1x8x128xbf16, #tpu.memory_space<vmem>>) attributes {dimension_semantics = [#tpu.dimension_semantics<parallel>, #tpu.dimension_semantics<parallel>], iteration_bounds = array<i64: 2, 1>, scalar_prefetch = 0 : i64, scratch_operands = 0 : i64, tpu.core_type = #tpu.core_type<tc>, window_params = [{transform_indices = @transform_0, window_bounds = array<i64: 1, 16, 128>}, {transform_indices = @transform_1, window_bounds = array<i64: 1, 16, 128>}, {pipeline_mode = #tpu.pipeline_mode<synchronous>, transform_indices = @transform_2, window_bounds = array<i64: 8, 48>}, {pipeline_mode = #tpu.pipeline_mode<synchronous>, transform_indices = @transform_3, window_bounds = array<i64: 8, 1>}, {transform_indices = @transform_4, window_bounds = array<i64: 1, 8, 128>}]} {
    %c0 = arith.constant 0 : index
    %c0_0 = arith.constant 0 : index
    %c0_1 = arith.constant 0 : index
    %0 = vector.load %arg2[%c0, %c0_0, %c0_1] : memref<1x16x128xbf16, #tpu.memory_space<vmem>>, vector<1x16x128xbf16>
    %1 = vector.shape_cast %0 : vector<1x16x128xbf16> to vector<16x128xbf16>
    %c0_2 = arith.constant 0 : index
    %c0_3 = arith.constant 0 : index
    %c0_4 = arith.constant 0 : index
    %2 = vector.load %arg3[%c0_2, %c0_3, %c0_4] : memref<1x16x128xbf16, #tpu.memory_space<vmem>>, vector<1x16x128xbf16>
    %3 = vector.shape_cast %2 : vector<1x16x128xbf16> to vector<16x128xbf16>
    %4 = tpu.concatenate %1, %3 in 1 : vector<16x128xbf16>, vector<16x128xbf16> -> vector<16x256xbf16>
    %cst = arith.constant 0.000000e+00 : bf16
    %5 = vector.broadcast %cst : bf16 to vector<16x256xbf16>
    %6 = arith.cmpf oge, %4, %5 : vector<16x256xbf16>
    %cst_5 = arith.constant 1.000980e-01 : bf16
    %7 = vector.broadcast %cst_5 : bf16 to vector<16x256xbf16>
    %8 = arith.mulf %7, %4 : vector<16x256xbf16>
    %9 = arith.select %6, %4, %8 : vector<16x256xi1>, vector<16x256xbf16>
    %10 = vector.extract_strided_slice %9 {offsets = [0, 0], sizes = [16, 128], strides = [1, 1]} : vector<16x256xbf16> to vector<16x128xbf16>
    %11 = vector.extract_strided_slice %9 {offsets = [0, 1], sizes = [16, 128], strides = [1, 1]} : vector<16x256xbf16> to vector<16x128xbf16>
    %12 = vector.extract_strided_slice %9 {offsets = [0, 2], sizes = [16, 128], strides = [1, 1]} : vector<16x256xbf16> to vector<16x128xbf16>
    %13 = tpu.concatenate %10, %11, %12 in 0 : vector<16x128xbf16>, vector<16x128xbf16>, vector<16x128xbf16> -> vector<48x128xbf16>
    %c0_6 = arith.constant 0 : index
    %c0_7 = arith.constant 0 : index
    %14 = vector.load %arg4[%c0_6, %c0_7] : memref<8x48xbf16, #tpu.memory_space<vmem>>, vector<8x48xbf16>
    %cst_8 = arith.constant dense<0.000000e+00> : vector<8x128xf32>
    %15 = tpu.matmul %14, %13, %cst_8 {dimension_numbers = #tpu.dot_dimension_numbers<[1], [0], [0], [1], [0, 0, 1, 1], [], []>} : vector<8x48xbf16>, vector<48x128xbf16>, vector<8x128xf32> -> vector<8x128xf32>
    %c0_9 = arith.constant 0 : index
    %c0_10 = arith.constant 0 : index
    %16 = vector.load %arg5[%c0_9, %c0_10] : memref<8x1xf32, #tpu.memory_space<vmem>>, vector<8x1xf32>
    %17 = vector.broadcast %16 : vector<8x1xf32> to vector<8x128xf32>
    %18 = arith.addf %15, %17 : vector<8x128xf32>
    %19 = arith.truncf %18 : vector<8x128xf32> to vector<8x128xbf16>
    %c0_11 = arith.constant 0 : index
    %c0_12 = arith.constant 0 : index
    %c0_13 = arith.constant 0 : index
    %20 = vector.load %arg6[%c0_11, %c0_12, %c0_13] : memref<1x8x128xbf16, #tpu.memory_space<vmem>>, vector<1x8x128xbf16>
    %21 = vector.shape_cast %20 : vector<1x8x128xbf16> to vector<8x128xbf16>
    %22 = vector.shape_cast %19 : vector<8x128xbf16> to vector<1x8x128xbf16>
    tpu.vector_store %arg6[%c0_11, %c0_12, %c0_13], %22 {strides = array<i32>} : memref<1x8x128xbf16, #tpu.memory_space<vmem>>, vector<1x8x128xbf16>,
    return
  }
  func.func @transform_0(%arg0: i32, %arg1: i32) -> (i32, i32, i32) {
    %c0_i32 = arith.constant 0 : i32
    %c0_i32_0 = arith.constant 0 : i32
    return %arg0, %c0_i32, %arg1 : i32, i32, i32
  }
  func.func @transform_1(%arg0: i32, %arg1: i32) -> (i32, i32, i32) {
    %c1_i32 = arith.constant 1 : i32
    %0 = arith.addi %arg1, %c1_i32 : i32
    %c1_i32_0 = arith.constant 1 : i32
    %1 = arith.muli %0, %c1_i32_0 : i32
    %c0_i32 = arith.constant 0 : i32
    %c0_i32_1 = arith.constant 0 : i32
    return %arg0, %c0_i32, %1 : i32, i32, i32
  }
  func.func @transform_2(%arg0: i32, %arg1: i32) -> (i32, i32) {
    %c0_i32 = arith.constant 0 : i32
    %c0_i32_0 = arith.constant 0 : i32
    %c0_i32_1 = arith.constant 0 : i32
    return %c0_i32, %c0_i32_0 : i32, i32
  }
  func.func @transform_3(%arg0: i32, %arg1: i32) -> (i32, i32) {
    %c0_i32 = arith.constant 0 : i32
    %c0_i32_0 = arith.constant 0 : i32
    %c0_i32_1 = arith.constant 0 : i32
    return %c0_i32, %c0_i32_0 : i32, i32
  }
  func.func @transform_4(%arg0: i32, %arg1: i32) -> (i32, i32, i32) {
    %c0_i32 = arith.constant 0 : i32
    %c0_i32_0 = arith.constant 0 : i32
    return %arg0, %c0_i32, %arg1 : i32, i32, i32
  }
}

module attributes {stable_mosaic.version = 11 : i64} {
  func.func @_conv1d_kernel(%arg0: i32, %arg1: i32, %arg2: memref<1x16x128xbf16, #tpu.memory_space<vmem>>, %arg3: memref<1x16x128xbf16, #tpu.memory_space<vmem>>, %arg4: memref<8x112xbf16, #tpu.memory_space<vmem>>, %arg5: memref<8x1xf32, #tpu.memory_space<vmem>>, %arg6: memref<1x8x128xf32, #tpu.memory_space<vmem>>) attributes {dimension_semantics = [#tpu.dimension_semantics<parallel>, #tpu.dimension_semantics<parallel>], iteration_bounds = array<i64: 2, 1>, scalar_prefetch = 0 : i64, scratch_operands = 0 : i64, tpu.core_type = #tpu.core_type<tc>, window_params = [{transform_indices = @transform_0, window_bounds = array<i64: 1, 16, 128>}, {transform_indices = @transform_1, window_bounds = array<i64: 1, 16, 128>}, {pipeline_mode = #tpu.pipeline_mode<synchronous>, transform_indices = @transform_2, window_bounds = array<i64: 8, 112>}, {pipeline_mode = #tpu.pipeline_mode<synchronous>, transform_indices = @transform_3, window_bounds = array<i64: 8, 1>}, {transform_indices = @transform_4, window_bounds = array<i64: 1, 8, 128>}]} {
    %c0 = arith.constant 0 : index
    %c0_0 = arith.constant 0 : index
    %c0_1 = arith.constant 0 : index
    %0 = vector.load %arg2[%c0, %c0_0, %c0_1] : memref<1x16x128xbf16, #tpu.memory_space<vmem>>, vector<1x16x128xbf16>
    %1 = vector.shape_cast %0 : vector<1x16x128xbf16> to vector<16x128xbf16>
    %c0_2 = arith.constant 0 : index
    %c0_3 = arith.constant 0 : index
    %c0_4 = arith.constant 0 : index
    %2 = vector.load %arg3[%c0_2, %c0_3, %c0_4] : memref<1x16x128xbf16, #tpu.memory_space<vmem>>, vector<1x16x128xbf16>
    %3 = vector.shape_cast %2 : vector<1x16x128xbf16> to vector<16x128xbf16>
    %4 = tpu.concatenate %1, %3 in 1 : vector<16x128xbf16>, vector<16x128xbf16> -> vector<16x256xbf16>
    %cst = arith.constant 0.000000e+00 : bf16
    %5 = vector.broadcast %cst : bf16 to vector<16x256xbf16>
    %6 = arith.cmpf oge, %4, %5 : vector<16x256xbf16>
    %cst_5 = arith.constant 1.000980e-01 : bf16
    %7 = vector.broadcast %cst_5 : bf16 to vector<16x256xbf16>
    %8 = arith.mulf %7, %4 : vector<16x256xbf16>
    %9 = arith.select %6, %4, %8 : vector<16x256xi1>, vector<16x256xbf16>
    %10 = vector.extract_strided_slice %9 {offsets = [0, 0], sizes = [16, 128], strides = [1, 1]} : vector<16x256xbf16> to vector<16x128xbf16>
    %11 = vector.extract_strided_slice %9 {offsets = [0, 1], sizes = [16, 128], strides = [1, 1]} : vector<16x256xbf16> to vector<16x128xbf16>
    %12 = vector.extract_strided_slice %9 {offsets = [0, 2], sizes = [16, 128], strides = [1, 1]} : vector<16x256xbf16> to vector<16x128xbf16>
    %13 = vector.extract_strided_slice %9 {offsets = [0, 3], sizes = [16, 128], strides = [1, 1]} : vector<16x256xbf16> to vector<16x128xbf16>
    %14 = vector.extract_strided_slice %9 {offsets = [0, 4], sizes = [16, 128], strides = [1, 1]} : vector<16x256xbf16> to vector<16x128xbf16>
    %15 = vector.extract_strided_slice %9 {offsets = [0, 5], sizes = [16, 128], strides = [1, 1]} : vector<16x256xbf16> to vector<16x128xbf16>
    %16 = vector.extract_strided_slice %9 {offsets = [0, 6], sizes = [16, 128], strides = [1, 1]} : vector<16x256xbf16> to vector<16x128xbf16>
    %17 = tpu.concatenate %10, %11, %12, %13, %14, %15, %16 in 0 : vector<16x128xbf16>, vector<16x128xbf16>, vector<16x128xbf16>, vector<16x128xbf16>, vector<16x128xbf16>, vector<16x128xbf16>, vector<16x128xbf16> -> vector<112x128xbf16>
    %c0_6 = arith.constant 0 : index
    %c0_7 = arith.constant 0 : index
    %18 = vector.load %arg4[%c0_6, %c0_7] : memref<8x112xbf16, #tpu.memory_space<vmem>>, vector<8x112xbf16>
    %cst_8 = arith.constant dense<0.000000e+00> : vector<8x128xf32>
    %19 = tpu.matmul %18, %17, %cst_8 {dimension_numbers = #tpu.dot_dimension_numbers<[1], [0], [0], [1], [0, 0, 1, 1], [], []>} : vector<8x112xbf16>, vector<112x128xbf16>, vector<8x128xf32> -> vector<8x128xf32>
    %c0_9 = arith.constant 0 : index
    %c0_10 = arith.constant 0 : index
    %20 = vector.load %arg5[%c0_9, %c0_10] : memref<8x1xf32, #tpu.memory_space<vmem>>, vector<8x1xf32>
    %21 = vector.broadcast %20 : vector<8x1xf32> to vector<8x128xf32>
    %22 = arith.addf %19, %21 : vector<8x128xf32>
    %23 = math.tanh %22 : vector<8x128xf32>
    %c0_11 = arith.constant 0 : index
    %c0_12 = arith.constant 0 : index
    %c0_13 = arith.constant 0 : index
    %24 = vector.load %arg6[%c0_11, %c0_12, %c0_13] : memref<1x8x128xf32, #tpu.memory_space<vmem>>, vector<1x8x128xf32>
    %25 = vector.shape_cast %24 : vector<1x8x128xf32> to vector<8x128xf32>
    %26 = vector.shape_cast %23 : vector<8x128xf32> to vector<1x8x128xf32>
    tpu.vector_store %arg6[%c0_11, %c0_12, %c0_13], %26 {strides = array<i32>} : memref<1x8x128xf32, #tpu.memory_space<vmem>>, vector<1x8x128xf32>,
    return
  }
  func.func @transform_0(%arg0: i32, %arg1: i32) -> (i32, i32, i32) {
    %c0_i32 = arith.constant 0 : i32
    %c0_i32_0 = arith.constant 0 : i32
    return %arg0, %c0_i32, %arg1 : i32, i32, i32
  }
  func.func @transform_1(%arg0: i32, %arg1: i32) -> (i32, i32, i32) {
    %c1_i32 = arith.constant 1 : i32
    %0 = arith.addi %arg1, %c1_i32 : i32
    %c1_i32_0 = arith.constant 1 : i32
    %1 = arith.muli %0, %c1_i32_0 : i32
    %c0_i32 = arith.constant 0 : i32
    %c0_i32_1 = arith.constant 0 : i32
    return %arg0, %c0_i32, %1 : i32, i32, i32
  }
  func.func @transform_2(%arg0: i32, %arg1: i32) -> (i32, i32) {
    %c0_i32 = arith.constant 0 : i32
    %c0_i32_0 = arith.constant 0 : i32
    %c0_i32_1 = arith.constant 0 : i32
    return %c0_i32, %c0_i32_0 : i32, i32
  }
  func.func @transform_3(%arg0: i32, %arg1: i32) -> (i32, i32) {
    %c0_i32 = arith.constant 0 : i32
    %c0_i32_0 = arith.constant 0 : i32
    %c0_i32_1 = arith.constant 0 : i32
    return %c0_i32, %c0_i32_0 : i32, i32
  }
  func.func @transform_4(%arg0: i32, %arg1: i32) -> (i32, i32, i32) {
    %c0_i32 = arith.constant 0 : i32
    %c0_i32_0 = arith.constant 0 : i32
    return %arg0, %c0_i32, %arg1 : i32, i32, i32
  }
}

</mosaic_0001>

<bundles_post_ra>
// kernel: tile.13
= control target key start
LH: loop header
LB: loop body
LE: loop exit
PB: predicated region body
PF: predicated region fallthrough
CT: control target
= control target key end

     0   :  { %s22_s0 = inlined_call_operand.vmem [shape: f32[16], index: 0, kind: input, shape index: {}]   ;;  %s23_s1 = inlined_call_operand.vmem [shape: f32[2,16], index: 1, kind: output, shape index: {}]  }
   0x1   :  { %v4_v0 = vld [vmem:[%s22_s0] ss:$0 sm:$0xff] }
   0x2   :  { %5 = vst [vmem:[%s23_s1] sm:$0x3] %v4_v0 }

// kernel: generator_forward.8
= control target key start
LH: loop header
LB: loop body
LE: loop exit
PB: predicated region body
PF: predicated region fallthrough
CT: control target
= control target key end

     0   :  { %s817_s15 = smov 0   ;;  %s819_s16 = smov 0   ;;  %s916_s0 = inlined_call_operand.vmem [shape: bf16[2,16,256], index: 0, kind: input, shape index: {}, may-alias: {0,1}]   ;;  %s917_s1 = inlined_call_operand.vmem [shape: bf16[2,16,256], index: 1, kind: input, shape index: {}, may-alias: {0,1}]   ;;  %s918_s2 = inlined_call_operand.vmem [shape: bf16[32,112], index: 2, kind: input, shape index: {}]   ;;  %s919_s3 = inlined_call_operand.vmem [shape: f32[32,1], index: 3, kind: input, shape index: {}]   ;;  %s920_s4 = inlined_call_operand.vmem [shape: bf16[2,32,128], index: 4, kind: output, shape index: {}]  }
   0x1   :  { %s821_s17 = smov 0   ;;  %s823_s18 = smov 0  }
   0x2   :  { %s825_s19 = smov 0  }
   0x3 LB: > { %s26_s20 = sadd.s32 1, %s779_s18  ;;  %p42_p1 = scmp.ne.s32.totalorder %s771_s16, %s767_s15  ;;  %s783_s19 = sphi %s825_s19, %s14_s19   ;;  %s779_s18 = sphi %s823_s18, %s925_s18   ;;  %s775_s17 = sphi %s821_s17, %s924_s17   ;;  %s771_s16 = sphi %s819_s16, %s923_s16   ;;  %s767_s15 = sphi %s817_s15, %s922_s15  }
   0x4   : > { %p28_p0 = scmp.ge.s32.totalorder %s26_s20, 2  ;;  %p43_p2 = scmp.eq.s32.totalorder %s783_s19, 0 }
   0x5   : > { %s35_s23 = sadd.s32 1, %s771_s16  ;;  %p621_p5 = scmp.ge.s32.totalorder %s783_s19, 2 }
   0x6   : > { %s927_s20 = smov (%p28_p0, %s26_s20), 0  ;;  %p848_p3 = por %p43_p2, %p42_p1 }
   0x7   : > { %s30_s22 = ssub.s32 %s779_s18, %s927_s20  ;;  %174 = sbr.rel (%p621_p5) target bundleno = 28 (0x1c), region = 24 }
   0x8   : > { %p33_p4 = scmp.eq.s32.totalorder %s30_s22, 0 }
   0xa   : > { %s856_s24 = scalar_select %p33_p4, %s771_s16, %s35_s23  }
   0xe   : > { %177 = sbr.rel (!%p848_p3) target bundleno = 21 (0x15), region = 28  ;;  %s179_s25 = sand.u32 (%p848_p3), 1, %s771_s16  }
   0xf   : > { %s647_s26 = sshll.u32 (%p848_p3), %s779_s18, 4  ;;  %s622_s27 = sshll.u32 (%p848_p3), %s179_s25, 3 }
  0x10   : > { %s185_s30 = scalar_lea.vmem (%p848_p3), %s916_s0, %s647_s26  ;;  %s181_s5 = scalar_lea.vmem (%p848_p3), [#allocation2], %s622_s27 }
  0x11   : > { %v201_v0 = vld [vmem:[%s185_s30] sm:$0xf] (%p848_p3)  ;;  %v203_v1 = vld [vmem:[%s185_s30 + $0x8] sm:$0xf] (%p848_p3) }
  0x12   : > { %202 = vst [vmem:[%s181_s5] sm:$0xf] (%p848_p3), %v201_v0  ;;  %204 = vst [vmem:[%s181_s5 + $0x4] sm:$0xf] (%p848_p3), %v203_v1 }
  0x15 PF: > { %231 = sbr.rel (!%p848_p3) target bundleno = 28 (0x1c), region = 69  ;;  %s233_s6 = sand.u32 (%p848_p3), 1, %s771_s16  }
  0x16   : > { %s648_s7 = sshll.u32 (%p848_p3), %s779_s18, 4  ;;  %s625_s8 = sshll.u32 (%p848_p3), %s233_s6, 3 }
  0x17   : > { %s550_s11 = scalar_lea.vmem (%p848_p3), %s917_s1, %s648_s7  ;;  %s235_s12 = scalar_lea.vmem (%p848_p3), [#allocation3], %s625_s8 }
  0x18   : > { %v628_v2 = vld [vmem:[%s550_s11 + $0x4] sm:$0xf] (%p848_p3)  ;;  %v629_v3 = vld [vmem:[%s550_s11 + $0xc] sm:$0xf] (%p848_p3) }
  0x19   : > { %257 = vst [vmem:[%s235_s12] sm:$0xf] (%p848_p3), %v628_v2  ;;  %259 = vst [vmem:[%s235_s12 + $0x4] sm:$0xf] (%p848_p3), %v629_v3 }
  0x1c PF: > { %p630_p6 = scmp.ge.s32.totalorder %s783_s19, 1  ;;  %p285_p7 = scmp.lt.s32.totalorder %s783_s19, 3 }
  0x1e   : > { %p286_p8 = pnand %p630_p6, %p285_p7 }
  0x1f   : > { %s292_s13 = sand.u32 (!%p286_p8), 1, %s767_s15   ;;  %s785_s23 = smov (!%p286_p8), 126   ;;  %v743_v6 = vld [vmem:[%s918_s2] sm:$0xff] (!%p286_p8)   ;;  %vm436_vm0 = vcmask (!%p286_p8), 916480   ;;  %v790_v7 = vmov (!%p286_p8), 0   ;;  %v403_v8 = vld [vmem:[%s919_s3 + $0x8] sm:$0xff] (!%p286_p8) }
  0x20   : > { %289 = sbr.rel (%p286_p8) target bundleno = 399 (0x18f), region = 110  ;;  %s631_s14 = sshll.u32 (!%p286_p8), %s292_s13, 3  ;;  %688 = vmatprep.mubr.msk.bf16.mxu0 (!%p286_p8), %vm436_vm0, %v743_v6  ;;  %740 = vset.pattern.permute.xlu1 (!%p286_p8), %v790_v7  ;;  %v402_v9 = vld [vmem:[%s919_s3] sm:$0xff] (!%p286_p8)  ;;  %v404_v10 = vld [vmem:[%s919_s3 + $0x10] sm:$0xff] (!%p286_p8)  ;;  %v405_v11 = vld [vmem:[%s919_s3 + $0x18] sm:$0xff] (!%p286_p8)  ;;  %vm360_vm1 = vcmask (!%p286_p8), 1039360  }
  0x21   : > { %s294_s21 = scalar_lea.vmem (!%p286_p8), [#allocation2], %s631_s14  ;;  %s301_s22 = scalar_lea.vmem (!%p286_p8), [#allocation3], %s631_s14  ;;  %739 = vset.pattern.permute.xlu0 (!%p286_p8), %v790_v7  ;;  %vm367_vm2 = vcmask (!%p286_p8), 1031168   ;;  %vm374_vm3 = vcmask (!%p286_p8), 1022976   ;;  %vm381_vm4 = vcmask (!%p286_p8), 1014784   ;;  %vm388_vm5 = vcmask (!%p286_p8), 1006592  }
  0x22   : > { %v741_v4 = vld [vmem:[%s294_s21] sm:$0xff] (!%p286_p8)   ;;  %s786_s25 = smov (!%p286_p8), 127   ;;  %v742_v5 = vld [vmem:[%s301_s22] sm:$0xff] (!%p286_p8)   ;;  %s787_s26 = smov (!%p286_p8), 125   ;;  %vm395_vm6 = vcmask (!%p286_p8), 998400  }
  0x23   : > { %363 = vrot.lane.b32.xlu1 (!%p286_p8), %v741_v4, %s785_s23  ;;  %356 = vrot.lane.b32.xlu0 (!%p286_p8), %v741_v4, %s786_s25  ;;  %s788_s27 = smov (!%p286_p8), 124   ;;  %s789_s29 = smov (!%p286_p8), 123   ;;  %v744_v30 = vld [vmem:[%s918_s2 + $0x8] sm:$0xff] (!%p286_p8)  }
  0x24   : > { %674 = vmatprep.subr.bf16.mxu0 (!%p286_p8), %v741_v4  ;;  %s791_s30 = smov (!%p286_p8), 122   ;;  %p332_p9 = scmp.lt.s32.totalorder (!%p286_p8), %s775_s17, 1 }
  0x25   : > { %675 = vmatpush3.bf16.msra.mxu0 (!%p286_p8), %v741_v4 }
  0x27   : > { %365 = vrot.lane.b32.xlu1 %v742_v5, %s785_s23  ;;  %358 = vrot.lane.b32.xlu0 %v742_v5, %s786_s25  ;;  %s929_s17 = smov (!%p332_p9, %s775_s17), 1 }
  0x28   : > { %s649_s21 = sshll.u32 %s929_s17, 4 }
  0x29   : > { %s339_s25 = scalar_lea.vmem %s920_s4, %s649_s21 }
  0x2b   : > { %372 = vrot.lane.b32.xlu1 %v742_v5, %s787_s26  ;;  %370 = vrot.lane.b32.xlu0 %v741_v4, %s787_s26 }
  0x2f   : > { %379 = vrot.lane.b32.xlu1 %v742_v5, %s788_s27  ;;  %377 = vrot.lane.b32.xlu0 %v741_v4, %s788_s27 }
  0x33   : > { %386 = vrot.lane.b32.xlu1 %v742_v5, %s789_s29  ;;  %384 = vrot.lane.b32.xlu0 %v741_v4, %s789_s29 }
  0x37   : > { %393 = vrot.lane.b32.xlu1 %v742_v5, %s791_s30  ;;  %391 = vrot.lane.b32.xlu0 %v741_v4, %s791_s30 }
  0x3b   : > { %413 = vperm.xlu1 %740, %v403_v8   ;;  %408 = vperm.xlu0 %739, %v402_v9  }
  0x3f   : > { %418 = vperm.xlu1 %740, %v404_v10   ;;  %423 = vperm.xlu0 %739, %v405_v11  }
  0x95   : > { %v364_v12 = vpop.permute.xlu1 %363  ;;  %v357_v13 = vpop.permute.xlu0 %356 }
  0x99   : > { %v366_v14 = vpop.permute.xlu1 %365  ;;  %v359_v15 = vpop.permute.xlu0 %358 }
  0x9a   : > { %v361_v16 = vsel %vm360_vm1, %v357_v13, %v359_v15  ;;  %v368_v17 = vsel %vm367_vm2, %v364_v12, %v366_v14 }
  0x9b   : > { %676 = vmatprep.subr.bf16.mxu0 %v361_v16 }
  0x9c   : > { %677 = vmatpush3.bf16.msra.mxu0 %v361_v16 }
  0x9d   : > { %678 = vmatprep.subr.bf16.mxu0 %v368_v17  ;;  %v373_v18 = vpop.permute.xlu1 %372  ;;  %v371_v19 = vpop.permute.xlu0 %370 }
  0x9e   : > { %v375_v20 = vsel %vm374_vm3, %v371_v19, %v373_v18 }
  0xa0   : > { %679 = vmatpush3.bf16.msra.mxu0 %v368_v17 }
  0xa1   : > { %680 = vmatprep.subr.bf16.mxu0 %v375_v20  ;;  %v380_v21 = vpop.permute.xlu1 %379  ;;  %v378_v22 = vpop.permute.xlu0 %377 }
  0xa2   : > { %v382_v23 = vsel %vm381_vm4, %v378_v22, %v380_v21 }
  0xa4   : > { %681 = vmatpush3.bf16.msra.mxu0 %v375_v20 }
  0xa5   : > { %682 = vmatprep.subr.bf16.mxu0 %v382_v23  ;;  %v387_v24 = vpop.permute.xlu1 %386  ;;  %v385_v25 = vpop.permute.xlu0 %384 }
  0xa6   : > { %v389_v26 = vsel %vm388_vm5, %v385_v25, %v387_v24 }
  0xa8   : > { %683 = vmatpush3.bf16.msra.mxu0 %v382_v23 }
  0xa9   : > { %684 = vmatprep.subr.bf16.mxu0 %v389_v26  ;;  %v394_v27 = vpop.permute.xlu1 %393  ;;  %v392_v28 = vpop.permute.xlu0 %391 }
  0xaa   : > { %v396_v29 = vsel %vm395_vm6, %v392_v28, %v394_v27 }
  0xac   : > { %685 = vmatpush3.bf16.msra.mxu0 %v389_v26 }
  0xad   : > { %686 = vmatprep.subr.bf16.mxu0 %v396_v29 }
  0xb0   : > { %687 = vmatpush3.bf16.msra.mxu0 %v396_v29 }
  0xb3   : > { %689 = vmatmul.mubr.msk.bf16.vlgmr.msra.gmra.mrb[0].mxu0 %vm436_vm0, %v744_v30 }
  0xba   : > { %v414_v31 = vpop.permute.xlu1 %413  ;;  %v409_v32 = vpop.permute.xlu0 %408 }
  0xbe   : > { %v419_v33 = vpop.permute.xlu1 %418  ;;  %v424_v36 = vpop.permute.xlu0 %423 }
 0x186   : > { %v690_v34 = vpop.f32.mrb[0].mxu0 }
 0x187   : > { %v477_v35 = vpop.f32.mrb[1].mxu0  ;;  %v486_v38 = vadd.f32 %v690_v34, %v419_v33 }
 0x188   : > { %v691_v37 = vpop.f32.mrb[2].mxu0  ;;  %v478_v41 = vadd.f32 %v477_v35, %v409_v32 }
 0x189   : > { %v489_v39 = vadd.f32 %v691_v37, %v424_v36  ;;  %v480_v40 = vpop.f32.mrb[3].mxu0 }
 0x18a   : > { %v481_v42 = vadd.f32 %v480_v40, %v414_v31 }
 0x18b   : > { %v662_v43 = vpack.c.bf16 %v489_v39, %v486_v38 }
 0x18c   : > { %v657_v44 = vpack.c.bf16 %v481_v42, %v478_v41 }
 0x18d   : > { %664 = vst [vmem:[%s339_s25 + $0x8] sm:$0xff] %v662_v43  }
 0x18e   : > { %658 = vst [vmem:[%s339_s25] sm:$0xff] %v657_v44  }
 0x18f PF: > { %s14_s19 = sadd.s32 1, %s783_s19   ;;  %s922_s15 = smov %s771_s16 }
 0x190   : > { %p11_p10 = scmp.ge.s32.totalorder %s14_s19, 4   ;;  %s923_s16 = smov %s856_s24 }
 0x191   : > { %s924_s17 = smov %s779_s18  ;;  %s925_s18 = smov %s927_s20 }
 0x192   :  { %13 = sbr.rel (!%p11_p10) target bundleno = 3 (0x3), region = 161 }

// kernel: generator_forward.9
= control target key start
LH: loop header
LB: loop body
LE: loop exit
PB: predicated region body
PF: predicated region fallthrough
CT: control target
= control target key end

     0   :  { %s846_s15 = smov 0   ;;  %s848_s16 = smov 0   ;;  %s945_s0 = inlined_call_operand.vmem [shape: bf16[2,32,256], index: 0, kind: input, shape index: {}, may-alias: {0,1}]   ;;  %s946_s1 = inlined_call_operand.vmem [shape: bf16[2,32,256], index: 1, kind: input, shape index: {}, may-alias: {0,1}]   ;;  %s947_s2 = inlined_call_operand.vmem [shape: bf16[32,96], index: 2, kind: input, shape index: {}]   ;;  %s948_s3 = inlined_call_operand.vmem [shape: f32[32,1], index: 3, kind: input, shape index: {}]   ;;  %s949_s4 = inlined_call_operand.vmem [shape: bf16[2,32,128], index: 4, kind: output, shape index: {}]  }
   0x1   :  { %s850_s17 = smov 0   ;;  %s852_s18 = smov 0  }
   0x2   :  { %s854_s19 = smov 0  }
   0x3 LB: > { %s26_s20 = sadd.s32 1, %s812_s18  ;;  %p42_p1 = scmp.ne.s32.totalorder %s804_s16, %s800_s15  ;;  %s816_s19 = sphi %s854_s19, %s14_s19   ;;  %s812_s18 = sphi %s852_s18, %s954_s18   ;;  %s808_s17 = sphi %s850_s17, %s953_s17   ;;  %s804_s16 = sphi %s848_s16, %s952_s16   ;;  %s800_s15 = sphi %s846_s15, %s951_s15  }
   0x4   : > { %p28_p0 = scmp.ge.s32.totalorder %s26_s20, 2  ;;  %p43_p2 = scmp.eq.s32.totalorder %s816_s19, 0 }
   0x5   : > { %s35_s23 = sadd.s32 1, %s804_s16  ;;  %p655_p5 = scmp.ge.s32.totalorder %s816_s19, 2 }
   0x6   : > { %s956_s20 = smov (%p28_p0, %s26_s20), 0  ;;  %p877_p3 = por %p43_p2, %p42_p1 }
   0x7   : > { %s30_s22 = ssub.s32 %s812_s18, %s956_s20  ;;  %174 = sbr.rel (%p655_p5) target bundleno = 28 (0x1c), region = 24 }
   0x8   : > { %p33_p4 = scmp.eq.s32.totalorder %s30_s22, 0 }
   0xa   : > { %s885_s24 = scalar_select %p33_p4, %s804_s16, %s35_s23  }
   0xe   : > { %177 = sbr.rel (!%p877_p3) target bundleno = 21 (0x15), region = 28  ;;  %s179_s25 = sand.u32 (%p877_p3), 1, %s804_s16  }
   0xf   : > { %s685_s26 = sshll.u32 (%p877_p3), %s812_s18, 5  ;;  %s656_s27 = sshll.u32 (%p877_p3), %s179_s25, 4 }
  0x10   : > { %s185_s30 = scalar_lea.vmem (%p877_p3), %s945_s0, %s685_s26  ;;  %s181_s5 = scalar_lea.vmem (%p877_p3), [#allocation2], %s656_s27 }
  0x11   : > { %v201_v0 = vld [vmem:[%s185_s30] sm:$0xf] (%p877_p3)  ;;  %v203_v1 = vld [vmem:[%s185_s30 + $0x8] sm:$0xf] (%p877_p3)  ;;  %v205_v2 = vld [vmem:[%s185_s30 + $0x10] sm:$0xf] (%p877_p3) }
  0x12   : > { %202 = vst [vmem:[%s181_s5] sm:$0xf] (%p877_p3), %v201_v0  ;;  %204 = vst [vmem:[%s181_s5 + $0x4] sm:$0xf] (%p877_p3), %v203_v1  ;;  %v207_v3 = vld [vmem:[%s185_s30 + $0x18] sm:$0xf] (%p877_p3) }
  0x13   : > { %206 = vst [vmem:[%s181_s5 + $0x8] sm:$0xf] (%p877_p3), %v205_v2  ;;  %208 = vst [vmem:[%s181_s5 + $0xc] sm:$0xf] (%p877_p3), %v207_v3 }
  0x15 PF: > { %239 = sbr.rel (!%p877_p3) target bundleno = 28 (0x1c), region = 69  ;;  %s241_s6 = sand.u32 (%p877_p3), 1, %s804_s16  }
  0x16   : > { %s686_s7 = sshll.u32 (%p877_p3), %s812_s18, 5  ;;  %s659_s8 = sshll.u32 (%p877_p3), %s241_s6, 4 }
  0x17   : > { %s584_s11 = scalar_lea.vmem (%p877_p3), %s946_s1, %s686_s7  ;;  %s243_s12 = scalar_lea.vmem (%p877_p3), [#allocation3], %s659_s8 }
  0x18   : > { %v662_v4 = vld [vmem:[%s584_s11 + $0x4] sm:$0xf] (%p877_p3)  ;;  %v663_v5 = vld [vmem:[%s584_s11 + $0xc] sm:$0xf] (%p877_p3)  ;;  %v664_v6 = vld [vmem:[%s584_s11 + $0x14] sm:$0xf] (%p877_p3) }
  0x19   : > { %265 = vst [vmem:[%s243_s12] sm:$0xf] (%p877_p3), %v662_v4  ;;  %267 = vst [vmem:[%s243_s12 + $0x4] sm:$0xf] (%p877_p3), %v663_v5  ;;  %v665_v7 = vld [vmem:[%s584_s11 + $0x1c] sm:$0xf] (%p877_p3) }
  0x1a   : > { %269 = vst [vmem:[%s243_s12 + $0x8] sm:$0xf] (%p877_p3), %v664_v6  ;;  %271 = vst [vmem:[%s243_s12 + $0xc] sm:$0xf] (%p877_p3), %v665_v7 }
  0x1c PF: > { %p666_p6 = scmp.ge.s32.totalorder %s816_s19, 1  ;;  %p301_p7 = scmp.lt.s32.totalorder %s816_s19, 3 }
  0x1e   : > { %p302_p8 = pnand %p666_p6, %p301_p7 }
  0x1f   : > { %s308_s13 = sand.u32 (!%p302_p8), 1, %s800_s15   ;;  %s818_s23 = smov (!%p302_p8), 127   ;;  %v776_v20 = vld [vmem:[%s947_s2] sm:$0xff] (!%p302_p8)   ;;  %vm470_vm4 = vcmask (!%p302_p8), 785408   ;;  %v820_v21 = vmov (!%p302_p8), 0   ;;  %v437_v22 = vld [vmem:[%s948_s3 + $0x8] sm:$0xff] (!%p302_p8) }
  0x20   : > { %305 = sbr.rel (%p302_p8) target bundleno = 395 (0x18b), region = 110  ;;  %s667_s14 = sshll.u32 (!%p302_p8), %s308_s13, 4  ;;  %723 = vmatprep.mubr.msk.bf16.mxu0 (!%p302_p8), %vm470_vm4, %v776_v20  ;;  %771 = vset.pattern.permute.xlu1 (!%p302_p8), %v820_v21  ;;  %v436_v23 = vld [vmem:[%s948_s3] sm:$0xff] (!%p302_p8)  ;;  %v438_v24 = vld [vmem:[%s948_s3 + $0x10] sm:$0xff] (!%p302_p8)  ;;  %v439_v25 = vld [vmem:[%s948_s3 + $0x18] sm:$0xff] (!%p302_p8)  ;;  %vm414_vm5 = vcmask (!%p302_p8), 1039360  }
  0x21   : > { %s310_s21 = scalar_lea.vmem (!%p302_p8), [#allocation2], %s667_s14  ;;  %s317_s22 = scalar_lea.vmem (!%p302_p8), [#allocation3], %s667_s14  ;;  %770 = vset.pattern.permute.xlu0 (!%p302_p8), %v820_v21  ;;  %vm427_vm6 = vcmask (!%p302_p8), 1031168   ;;  %v777_v38 = vld [vmem:[%s947_s2 + $0x8] sm:$0xff] (!%p302_p8)  }
  0x22   : > { %v772_v8 = vld [vmem:[%s310_s21 + $0x8] sm:$0xff] (!%p302_p8)   ;;  %v773_v9 = vld [vmem:[%s310_s21] sm:$0xff] (!%p302_p8)   ;;  %s819_s26 = smov (!%p302_p8), 126   ;;  %p348_p9 = scmp.lt.s32.totalorder (!%p302_p8), %s808_s17, 1 }
  0x23   : > { %vm392_vm0 = vcmp.ge.bf16.partialorder (!%p302_p8), %v772_v8, 0  ;;  %v396_v10 = vmul.bf16 (!%p302_p8), 1036860877, %v772_v8  ;;  %v774_v11 = vld [vmem:[%s317_s22 + $0x8] sm:$0xff] (!%p302_p8)   ;;  %vm390_vm1 = vcmp.ge.bf16.partialorder (!%p302_p8), %v773_v9, 0  ;;  %v775_v13 = vld [vmem:[%s317_s22] sm:$0xff] (!%p302_p8)  }
  0x24   : > { %v394_v12 = vmul.bf16 (!%p302_p8), 1036860877, %v773_v9  ;;  %vm393_vm2 = vcmp.ge.bf16.partialorder (!%p302_p8), %v774_v11, 0  ;;  %v397_v15 = vmul.bf16 (!%p302_p8), 1036860877, %v774_v11  ;;  %vm391_vm3 = vcmp.ge.bf16.partialorder (!%p302_p8), %v775_v13, 0 }
  0x25   : > { %v400_v14 = vsel (!%p302_p8), %vm392_vm0, %v772_v8, %v396_v10  ;;  %v395_v17 = vmul.bf16 (!%p302_p8), 1036860877, %v775_v13 }
  0x26   : > { %410 = vrot.lane.b32.xlu1 (!%p302_p8), %v400_v14, %s818_s23  ;;  %v398_v16 = vsel (!%p302_p8), %vm390_vm1, %v773_v9, %v394_v12  ;;  %v401_v18 = vsel (!%p302_p8), %vm393_vm2, %v774_v11, %v397_v15 }
  0x27   : > { %406 = vrot.lane.b32.xlu0 %v398_v16, %s818_s23  ;;  %711 = vmatprep.subr.bf16.mxu0 %v398_v16  ;;  %v399_v19 = vsel %vm391_vm3, %v775_v13, %v395_v17  ;;  %s958_s17 = smov (!%p348_p9, %s808_s17), 1 }
  0x28   : > { %712 = vmatpush3.bf16.msra.mxu0 %v398_v16  ;;  %s687_s11 = sshll.u32 %s958_s17, 4 }
  0x29   : > { %713 = vmatprep.subr.bf16.mxu0 %v400_v14  ;;  %s355_s14 = scalar_lea.vmem %s949_s4, %s687_s11 }
  0x2a   : > { %412 = vrot.lane.b32.xlu1 %v401_v18, %s818_s23 }
  0x2b   : > { %408 = vrot.lane.b32.xlu0 %v399_v19, %s818_s23 }
  0x2c   : > { %714 = vmatpush3.bf16.msra.mxu0 %v400_v14 }
  0x2e   : > { %421 = vrot.lane.b32.xlu1 %v399_v19, %s819_s26 }
  0x2f   : > { %419 = vrot.lane.b32.xlu0 %v398_v16, %s819_s26 }
  0x32   : > { %425 = vrot.lane.b32.xlu1 %v401_v18, %s819_s26 }
  0x33   : > { %423 = vrot.lane.b32.xlu0 %v400_v14, %s819_s26 }
  0x36   : > { %447 = vperm.xlu1 %771, %v437_v22  }
  0x37   : > { %442 = vperm.xlu0 %770, %v436_v23  }
  0x3a   : > { %452 = vperm.xlu1 %771, %v438_v24  }
  0x3b   : > { %457 = vperm.xlu0 %770, %v439_v25  }
  0x98   : > { %v411_v26 = vpop.permute.xlu1 %410 }
  0x99   : > { %v407_v27 = vpop.permute.xlu0 %406 }
  0x9c   : > { %v413_v28 = vpop.permute.xlu1 %412 }
  0x9d   : > { %v409_v29 = vpop.permute.xlu0 %408  ;;  %v416_v31 = vsel %vm414_vm5, %v411_v26, %v413_v28 }
  0x9e   : > { %v415_v30 = vsel %vm414_vm5, %v407_v27, %v409_v29 }
  0x9f   : > { %715 = vmatprep.subr.bf16.mxu0 %v415_v30 }
  0xa0   : > { %716 = vmatpush3.bf16.msra.mxu0 %v415_v30  ;;  %v422_v32 = vpop.permute.xlu1 %421 }
  0xa1   : > { %717 = vmatprep.subr.bf16.mxu0 %v416_v31  ;;  %v420_v33 = vpop.permute.xlu0 %419 }
  0xa2   : > { %v428_v34 = vsel %vm427_vm6, %v420_v33, %v422_v32 }
  0xa4   : > { %718 = vmatpush3.bf16.msra.mxu0 %v416_v31  ;;  %v426_v35 = vpop.permute.xlu1 %425 }
  0xa5   : > { %719 = vmatprep.subr.bf16.mxu0 %v428_v34  ;;  %v424_v36 = vpop.permute.xlu0 %423 }
  0xa6   : > { %v429_v37 = vsel %vm427_vm6, %v424_v36, %v426_v35 }
  0xa8   : > { %720 = vmatpush3.bf16.msra.mxu0 %v428_v34 }
  0xa9   : > { %721 = vmatprep.subr.bf16.mxu0 %v429_v37 }
  0xac   : > { %722 = vmatpush3.bf16.msra.mxu0 %v429_v37 }
  0xaf   : > { %724 = vmatmul.mubr.msk.bf16.vlgmr.msra.gmra.mrb[0].mxu0 %vm470_vm4, %v777_v38 }
  0xb5   : > { %v448_v39 = vpop.permute.xlu1 %447 }
  0xb6   : > { %v443_v40 = vpop.permute.xlu0 %442 }
  0xb9   : > { %v453_v41 = vpop.permute.xlu1 %452 }
  0xba   : > { %v458_v44 = vpop.permute.xlu0 %457 }
 0x182   : > { %v725_v42 = vpop.f32.mrb[0].mxu0 }
 0x183   : > { %v511_v43 = vpop.f32.mrb[1].mxu0  ;;  %v520_v46 = vadd.f32 %v725_v42, %v453_v41 }
 0x184   : > { %v726_v45 = vpop.f32.mrb[2].mxu0  ;;  %v512_v49 = vadd.f32 %v511_v43, %v443_v40 }
 0x185   : > { %v523_v47 = vadd.f32 %v726_v45, %v458_v44  ;;  %v514_v48 = vpop.f32.mrb[3].mxu0 }
 0x186   : > { %v515_v50 = vadd.f32 %v514_v48, %v448_v39 }
 0x187   : > { %v700_v51 = vpack.c.bf16 %v523_v47, %v520_v46 }
 0x188   : > { %v695_v52 = vpack.c.bf16 %v515_v50, %v512_v49 }
 0x189   : > { %702 = vst [vmem:[%s355_s14 + $0x8] sm:$0xff] %v700_v51  }
 0x18a   : > { %696 = vst [vmem:[%s355_s14] sm:$0xff] %v695_v52  }
 0x18b PF: > { %s14_s19 = sadd.s32 1, %s816_s19   ;;  %s951_s15 = smov %s804_s16 }
 0x18c   : > { %p11_p10 = scmp.ge.s32.totalorder %s14_s19, 4   ;;  %s952_s16 = smov %s885_s24 }
 0x18d   : > { %s953_s17 = smov %s812_s18  ;;  %s954_s18 = smov %s956_s20 }
 0x18e   :  { %13 = sbr.rel (!%p11_p10) target bundleno = 3 (0x3), region = 161 }

// kernel: generator_forward.10
= control target key start
LH: loop header
LB: loop body
LE: loop exit
PB: predicated region body
PF: predicated region fallthrough
CT: control target
= control target key end

     0   :  { %s729_s15 = smov 0   ;;  %s731_s16 = smov 0   ;;  %s817_s0 = inlined_call_operand.vmem [shape: bf16[2,16,256], index: 0, kind: input, shape index: {}, may-alias: {0,1}]   ;;  %s818_s1 = inlined_call_operand.vmem [shape: bf16[2,16,256], index: 1, kind: input, shape index: {}, may-alias: {0,1}]   ;;  %s819_s2 = inlined_call_operand.vmem [shape: bf16[16,48], index: 2, kind: input, shape index: {}]   ;;  %s820_s3 = inlined_call_operand.vmem [shape: f32[16,1], index: 3, kind: input, shape index: {}]   ;;  %s821_s4 = inlined_call_operand.vmem [shape: bf16[2,16,128], index: 4, kind: output, shape index: {}]  }
   0x1   :  { %s733_s17 = smov 0   ;;  %s735_s18 = smov 0  }
   0x2   :  { %s737_s19 = smov 0  }
   0x3 LB: > { %s26_s20 = sadd.s32 1, %s693_s18  ;;  %p42_p1 = scmp.ne.s32.totalorder %s685_s16, %s681_s15  ;;  %s697_s19 = sphi %s737_s19, %s14_s19   ;;  %s693_s18 = sphi %s735_s18, %s826_s18   ;;  %s689_s17 = sphi %s733_s17, %s825_s17   ;;  %s685_s16 = sphi %s731_s16, %s824_s16   ;;  %s681_s15 = sphi %s729_s15, %s823_s15  }
   0x4   : > { %p28_p0 = scmp.ge.s32.totalorder %s26_s20, 2  ;;  %p43_p2 = scmp.eq.s32.totalorder %s697_s19, 0 }
   0x5   : > { %s35_s23 = sadd.s32 1, %s685_s16  ;;  %p563_p5 = scmp.ge.s32.totalorder %s697_s19, 2 }
   0x6   : > { %s828_s20 = smov (%p28_p0, %s26_s20), 0  ;;  %p760_p3 = por %p43_p2, %p42_p1 }
   0x7   : > { %s30_s22 = ssub.s32 %s693_s18, %s828_s20  ;;  %174 = sbr.rel (%p563_p5) target bundleno = 28 (0x1c), region = 24 }
   0x8   : > { %p33_p4 = scmp.eq.s32.totalorder %s30_s22, 0 }
   0xa   : > { %s768_s24 = scalar_select %p33_p4, %s685_s16, %s35_s23  }
   0xe   : > { %177 = sbr.rel (!%p760_p3) target bundleno = 21 (0x15), region = 28  ;;  %s179_s25 = sand.u32 (%p760_p3), 1, %s685_s16  }
   0xf   : > { %s585_s26 = sshll.u32 (%p760_p3), %s693_s18, 4  ;;  %s564_s27 = sshll.u32 (%p760_p3), %s179_s25, 3 }
  0x10   : > { %s185_s30 = scalar_lea.vmem (%p760_p3), %s817_s0, %s585_s26  ;;  %s181_s5 = scalar_lea.vmem (%p760_p3), [#allocation2], %s564_s27 }
  0x11   : > { %v201_v0 = vld [vmem:[%s185_s30] sm:$0xf] (%p760_p3)  ;;  %v203_v1 = vld [vmem:[%s185_s30 + $0x8] sm:$0xf] (%p760_p3) }
  0x12   : > { %202 = vst [vmem:[%s181_s5] sm:$0xf] (%p760_p3), %v201_v0  ;;  %204 = vst [vmem:[%s181_s5 + $0x4] sm:$0xf] (%p760_p3), %v203_v1 }
  0x15 PF: > { %231 = sbr.rel (!%p760_p3) target bundleno = 28 (0x1c), region = 69  ;;  %s233_s6 = sand.u32 (%p760_p3), 1, %s685_s16  }
  0x16   : > { %s586_s7 = sshll.u32 (%p760_p3), %s693_s18, 4  ;;  %s567_s8 = sshll.u32 (%p760_p3), %s233_s6, 3 }
  0x17   : > { %s492_s11 = scalar_lea.vmem (%p760_p3), %s818_s1, %s586_s7  ;;  %s235_s12 = scalar_lea.vmem (%p760_p3), [#allocation3], %s567_s8 }
  0x18   : > { %v570_v2 = vld [vmem:[%s492_s11 + $0x4] sm:$0xf] (%p760_p3)  ;;  %v571_v3 = vld [vmem:[%s492_s11 + $0xc] sm:$0xf] (%p760_p3) }
  0x19   : > { %257 = vst [vmem:[%s235_s12] sm:$0xf] (%p760_p3), %v570_v2  ;;  %259 = vst [vmem:[%s235_s12 + $0x4] sm:$0xf] (%p760_p3), %v571_v3 }
  0x1c PF: > { %p572_p6 = scmp.ge.s32.totalorder %s697_s19, 1  ;;  %p285_p7 = scmp.lt.s32.totalorder %s697_s19, 3 }
  0x1e   : > { %p286_p8 = pnand %p572_p6, %p285_p7 }
  0x1f   : > { %s292_s13 = sand.u32 (!%p286_p8), 1, %s681_s15   ;;  %v699_v4 = vmov (!%p286_p8), 0.0   ;;  %vm700_vm1 = vmmov (!%p286_p8), 0   ;;  %s701_s23 = smov (!%p286_p8), 126   ;;  %v703_v11 = vmov (!%p286_p8), 0   ;;  %v382_v12 = vld [vmem:[%s820_s3] sm:$0xff] (!%p286_p8) }
  0x20   : > { %289 = sbr.rel (%p286_p8) target bundleno = 384 (0x180), region = 110  ;;  %s573_s14 = sshll.u32 (!%p286_p8), %s292_s13, 3  ;;  %599 = vmatprep.subr.bf16.mxu0 (!%p286_p8), %v699_v4  ;;  %605 = vmatprep.mubr.msk.bf16.mxu0 (!%p286_p8), %vm700_vm1, %v699_v4  ;;  %v383_v13 = vld [vmem:[%s820_s3 + $0x8] sm:$0xff] (!%p286_p8)  ;;  %vm370_vm3 = vcmask (!%p286_p8), 1039360   ;;  %vm377_vm4 = vcmask (!%p286_p8), 1031168   ;;  %v658_v20 = vld [vmem:[%s819_s2] sm:$0xff] (!%p286_p8)  }
  0x21   : > { %s294_s21 = scalar_lea.vmem (!%p286_p8), [#allocation2], %s573_s14  ;;  %s301_s22 = scalar_lea.vmem (!%p286_p8), [#allocation3], %s573_s14  ;;  %654 = vset.pattern.permute.xlu0 (!%p286_p8), %v703_v11  ;;  %655 = vset.pattern.permute.xlu1 (!%p286_p8), %v703_v11  ;;  %vm399_vm5 = vcmask (!%p286_p8), 392192  }
  0x22   : > { %v656_v5 = vld [vmem:[%s294_s21] sm:$0xff] (!%p286_p8)   ;;  %v657_v6 = vld [vmem:[%s301_s22] sm:$0xff] (!%p286_p8)   ;;  %s702_s25 = smov (!%p286_p8), 127   ;;  %p332_p9 = scmp.lt.s32.totalorder (!%p286_p8), %s689_s17, 1 }
  0x23   : > { %vm358_vm0 = vcmp.ge.bf16.partialorder (!%p286_p8), %v656_v5, 0  ;;  %v360_v7 = vmul.bf16 (!%p286_p8), 1036860877, %v656_v5  ;;  %vm359_vm2 = vcmp.ge.bf16.partialorder (!%p286_p8), %v657_v6, 0  ;;  %v361_v8 = vmul.bf16 (!%p286_p8), 1036860877, %v657_v6 }
  0x25   : > { %v362_v9 = vsel (!%p286_p8), %vm358_vm0, %v656_v5, %v360_v7  ;;  %v363_v10 = vsel (!%p286_p8), %vm359_vm2, %v657_v6, %v361_v8 }
  0x26   : > { %373 = vrot.lane.b32.xlu1 (!%p286_p8), %v362_v9, %s701_s23  ;;  %366 = vrot.lane.b32.xlu0 (!%p286_p8), %v362_v9, %s702_s25 }
  0x27   : > { %600 = vmatpush3.bf16.msra.mxu0 %v362_v9  ;;  %s830_s17 = smov (!%p332_p9, %s689_s17), 1 }
  0x28   : > { %601 = vmatprep.subr.bf16.mxu0 %v699_v4  ;;  %s587_s5 = sshll.u32 %s830_s17, 3 }
  0x29   : > { %s339_s8 = scalar_lea.vmem %s821_s4, %s587_s5 }
  0x2a   : > { %375 = vrot.lane.b32.xlu1 %v363_v10, %s701_s23  ;;  %368 = vrot.lane.b32.xlu0 %v363_v10, %s702_s25 }
  0x2e   : > { %386 = vperm.xlu0 %654, %v382_v12   ;;  %391 = vperm.xlu1 %655, %v383_v13  }
  0x98   : > { %v374_v14 = vpop.permute.xlu1 %373  ;;  %v367_v15 = vpop.permute.xlu0 %366 }
  0x9c   : > { %v369_v16 = vpop.permute.xlu0 %368  ;;  %v376_v18 = vpop.permute.xlu1 %375 }
  0x9d   : > { %v371_v17 = vsel %vm370_vm3, %v367_v15, %v369_v16  ;;  %v378_v19 = vsel %vm377_vm4, %v374_v14, %v376_v18 }
  0x9e   : > { %602 = vmatpush3.bf16.msra.mxu0 %v371_v17 }
  0x9f   : > { %603 = vmatprep.subr.bf16.mxu0 %v699_v4 }
  0xa2   : > { %604 = vmatpush3.bf16.msra.mxu0 %v378_v19 }
  0xa5   : > { %606 = vmatmul.mubr.msk.bf16.vlgmr.msra.gmra.mrb[0].mxu0 %vm399_vm5, %v658_v20 }
  0xad   : > { %v387_v21 = vpop.permute.xlu0 %386  ;;  %v392_v23 = vpop.permute.xlu1 %391 }
 0x178   : > { %v437_v22 = vpop.f32.mrb[0].mxu0 }
 0x179   : > { %v607_v24 = vpop.f32.mrb[1].mxu0  ;;  %v438_v26 = vadd.f32 %v437_v22, %v387_v21 }
 0x17a   : > { %v440_v25 = vpop.f32.mrb[2].mxu0 }
 0x17b   : > { %v441_v27 = vadd.f32 %v440_v25, %v392_v23  ;;  %v608_v28 = vpop.f32.mrb[3].mxu0 }
 0x17d   : > { %v593_v29 = vpack.c.bf16 %v441_v27, %v438_v26 }
 0x17f   : > { %594 = vst [vmem:[%s339_s8] sm:$0xff] %v593_v29  }
 0x180 PF: > { %s14_s19 = sadd.s32 1, %s697_s19   ;;  %s823_s15 = smov %s685_s16 }
 0x181   : > { %p11_p10 = scmp.ge.s32.totalorder %s14_s19, 4   ;;  %s824_s16 = smov %s768_s24 }
 0x182   : > { %s825_s17 = smov %s693_s18  ;;  %s826_s18 = smov %s828_s20 }
 0x183   :  { %13 = sbr.rel (!%p11_p10) target bundleno = 3 (0x3), region = 161 }

// kernel: generator_forward.11
= control target key start
LH: loop header
LB: loop body
LE: loop exit
PB: predicated region body
PF: predicated region fallthrough
CT: control target
= control target key end

     0   :  { %s823_s18 = smov 0   ;;  %s825_s19 = smov 0   ;;  %s914_s0 = inlined_call_operand.vmem [shape: bf16[2,16,256], index: 0, kind: input, shape index: {}, may-alias: {0,1}]   ;;  %s915_s1 = inlined_call_operand.vmem [shape: bf16[2,16,256], index: 1, kind: input, shape index: {}, may-alias: {0,1}]   ;;  %s916_s2 = inlined_call_operand.vmem [shape: bf16[16,48], index: 2, kind: input, shape index: {}]   ;;  %s917_s3 = inlined_call_operand.vmem [shape: f32[16,1], index: 3, kind: input, shape index: {}]   ;;  %s918_s4 = inlined_call_operand.vmem [shape: bf16[2,16,128], index: 4, kind: input, shape index: {}]   ;;  %s919_s5 = inlined_call_operand.vmem [shape: bf16[2,16,128], index: 5, kind: output, shape index: {}]  }
   0x1   :  { %s827_s20 = smov 0   ;;  %s829_s21 = smov 0  }
   0x2   :  { %s831_s22 = smov 0  }
   0x3 LB: > { %s27_s23 = sadd.s32 1, %s782_s21  ;;  %p43_p1 = scmp.ne.s32.totalorder %s774_s19, %s770_s18  ;;  %s786_s22 = sphi %s831_s22, %s15_s22   ;;  %s782_s21 = sphi %s829_s21, %s924_s21   ;;  %s778_s20 = sphi %s827_s20, %s923_s20   ;;  %s774_s19 = sphi %s825_s19, %s922_s19   ;;  %s770_s18 = sphi %s823_s18, %s921_s18  }
   0x4   : > { %p29_p0 = scmp.ge.s32.totalorder %s27_s23, 2  ;;  %p44_p2 = scmp.eq.s32.totalorder %s786_s22, 0 }
   0x5   : > { %s36_s26 = sadd.s32 1, %s774_s19  ;;  %p645_p5 = scmp.ge.s32.totalorder %s786_s22, 2 }
   0x6   : > { %s926_s23 = smov (%p29_p0, %s27_s23), 0  ;;  %p854_p3 = por %p44_p2, %p43_p1 }
   0x7   : > { %s31_s25 = ssub.s32 %s782_s21, %s926_s23  ;;  %203 = sbr.rel (%p645_p5) target bundleno = 28 (0x1c), region = 24 }
   0x8   : > { %p34_p4 = scmp.eq.s32.totalorder %s31_s25, 0 }
   0xa   : > { %s862_s27 = scalar_select %p34_p4, %s774_s19, %s36_s26  }
   0xe   : > { %206 = sbr.rel (!%p854_p3) target bundleno = 21 (0x15), region = 28  ;;  %s208_s28 = sand.u32 (%p854_p3), 1, %s774_s19  }
   0xf   : > { %s669_s29 = sshll.u32 (%p854_p3), %s782_s21, 4  ;;  %s646_s30 = sshll.u32 (%p854_p3), %s208_s28, 3 }
  0x10   : > { %s214_s8 = scalar_lea.vmem (%p854_p3), %s914_s0, %s669_s29  ;;  %s210_s9 = scalar_lea.vmem (%p854_p3), [#allocation2], %s646_s30 }
  0x11   : > { %v230_v0 = vld [vmem:[%s214_s8] sm:$0xf] (%p854_p3)  ;;  %v232_v1 = vld [vmem:[%s214_s8 + $0x8] sm:$0xf] (%p854_p3) }
  0x12   : > { %231 = vst [vmem:[%s210_s9] sm:$0xf] (%p854_p3), %v230_v0  ;;  %233 = vst [vmem:[%s210_s9 + $0x4] sm:$0xf] (%p854_p3), %v232_v1 }
  0x15 PF: > { %260 = sbr.rel (!%p854_p3) target bundleno = 28 (0x1c), region = 69  ;;  %s262_s10 = sand.u32 (%p854_p3), 1, %s774_s19  }
  0x16   : > { %s670_s11 = sshll.u32 (%p854_p3), %s782_s21, 4  ;;  %s649_s12 = sshll.u32 (%p854_p3), %s262_s10, 3 }
  0x17   : > { %s556_s15 = scalar_lea.vmem (%p854_p3), %s915_s1, %s670_s11  ;;  %s264_s16 = scalar_lea.vmem (%p854_p3), [#allocation3], %s649_s12 }
  0x18   : > { %v652_v2 = vld [vmem:[%s556_s15 + $0x4] sm:$0xf] (%p854_p3)  ;;  %v653_v3 = vld [vmem:[%s556_s15 + $0xc] sm:$0xf] (%p854_p3) }
  0x19   : > { %286 = vst [vmem:[%s264_s16] sm:$0xf] (%p854_p3), %v652_v2  ;;  %288 = vst [vmem:[%s264_s16 + $0x4] sm:$0xf] (%p854_p3), %v653_v3 }
  0x1c PF: > { %p654_p6 = scmp.ge.s32.totalorder %s786_s22, 1  ;;  %p325_p7 = scmp.lt.s32.totalorder %s786_s22, 3 }
  0x1e   : > { %p326_p8 = pnand %p654_p6, %p325_p7 }
  0x1f   : > { %s332_s17 = sand.u32 (!%p326_p8), 1, %s770_s18   ;;  %v788_v4 = vmov (!%p326_p8), 0.0   ;;  %vm789_vm1 = vmmov (!%p326_p8), 0   ;;  %s790_s28 = smov (!%p326_p8), 124   ;;  %v792_v11 = vmov (!%p326_p8), 0   ;;  %v440_v12 = vld [vmem:[%s917_s3] sm:$0xff] (!%p326_p8) }
  0x20   : > { %329 = sbr.rel (%p326_p8) target bundleno = 386 (0x182), region = 114  ;;  %s655_s24 = sshll.u32 (!%p326_p8), %s332_s17, 3  ;;  %688 = vmatprep.subr.bf16.mxu0 (!%p326_p8), %v788_v4  ;;  %694 = vmatprep.mubr.msk.bf16.mxu0 (!%p326_p8), %vm789_vm1, %v788_v4  ;;  %v441_v13 = vld [vmem:[%s917_s3 + $0x8] sm:$0xff] (!%p326_p8)  ;;  %vm428_vm3 = vcmask (!%p326_p8), 1031168   ;;  %vm435_vm4 = vcmask (!%p326_p8), 1014784   ;;  %v747_v20 = vld [vmem:[%s916_s2] sm:$0xff] (!%p326_p8)  }
  0x21   : > { %s334_s25 = scalar_lea.vmem (!%p326_p8), [#allocation2], %s655_s24  ;;  %s341_s26 = scalar_lea.vmem (!%p326_p8), [#allocation3], %s655_s24  ;;  %743 = vset.pattern.permute.xlu0 (!%p326_p8), %v792_v11  ;;  %744 = vset.pattern.permute.xlu1 (!%p326_p8), %v792_v11  ;;  %vm457_vm5 = vcmask (!%p326_p8), 392192  }
  0x22   : > { %v745_v5 = vld [vmem:[%s334_s25] sm:$0xff] (!%p326_p8)   ;;  %v746_v6 = vld [vmem:[%s341_s26] sm:$0xff] (!%p326_p8)   ;;  %s791_s29 = smov (!%p326_p8), 126   ;;  %p382_p9 = scmp.lt.s32.totalorder (!%p326_p8), %s778_s20, 1 }
  0x23   : > { %vm416_vm0 = vcmp.ge.bf16.partialorder (!%p326_p8), %v745_v5, 0  ;;  %v418_v7 = vmul.bf16 (!%p326_p8), 1036860877, %v745_v5  ;;  %vm417_vm2 = vcmp.ge.bf16.partialorder (!%p326_p8), %v746_v6, 0  ;;  %v419_v8 = vmul.bf16 (!%p326_p8), 1036860877, %v746_v6 }
  0x25   : > { %v420_v9 = vsel (!%p326_p8), %vm416_vm0, %v745_v5, %v418_v7  ;;  %v421_v10 = vsel (!%p326_p8), %vm417_vm2, %v746_v6, %v419_v8 }
  0x26   : > { %431 = vrot.lane.b32.xlu1 (!%p326_p8), %v420_v9, %s790_s28  ;;  %424 = vrot.lane.b32.xlu0 (!%p326_p8), %v420_v9, %s791_s29 }
  0x27   : > { %689 = vmatpush3.bf16.msra.mxu0 %v420_v9  ;;  %s928_s20 = smov (!%p382_p9, %s778_s20), 1 }
  0x28   : > { %690 = vmatprep.subr.bf16.mxu0 %v788_v4  ;;  %s671_s10 = sshll.u32 %s928_s20, 3 }
  0x29   : > { %s389_s13 = scalar_lea.vmem %s918_s4, %s671_s10  ;;  %s397_s20 = scalar_lea.vmem %s919_s5, %s671_s10 }
  0x2a   : > { %433 = vrot.lane.b32.xlu1 %v421_v10, %s790_s28  ;;  %426 = vrot.lane.b32.xlu0 %v421_v10, %s791_s29  ;;  %v676_v22 = vld [vmem:[%s389_s13] sm:$0xff]  }
  0x2b   : > { %v677_v26 = vunpack.c.l.bf16 %v676_v22  ;;  %v678_v28 = vunpack.c.h.bf16 %v676_v22 }
  0x2e   : > { %444 = vperm.xlu0 %743, %v440_v12   ;;  %449 = vperm.xlu1 %744, %v441_v13  }
  0x98   : > { %v432_v14 = vpop.permute.xlu1 %431  ;;  %v425_v15 = vpop.permute.xlu0 %424 }
  0x9c   : > { %v427_v16 = vpop.permute.xlu0 %426  ;;  %v434_v18 = vpop.permute.xlu1 %433 }
  0x9d   : > { %v429_v17 = vsel %vm428_vm3, %v425_v15, %v427_v16  ;;  %v436_v19 = vsel %vm435_vm4, %v432_v14, %v434_v18 }
  0x9e   : > { %691 = vmatpush3.bf16.msra.mxu0 %v429_v17 }
  0x9f   : > { %692 = vmatprep.subr.bf16.mxu0 %v788_v4 }
  0xa2   : > { %693 = vmatpush3.bf16.msra.mxu0 %v436_v19 }
  0xa5   : > { %695 = vmatmul.mubr.msk.bf16.vlgmr.msra.gmra.mrb[0].mxu0 %vm457_vm5, %v747_v20 }
  0xad   : > { %v445_v21 = vpop.permute.xlu0 %444  ;;  %v450_v24 = vpop.permute.xlu1 %449 }
 0x178   : > { %v495_v23 = vpop.f32.mrb[0].mxu0 }
 0x179   : > { %v496_v25 = vadd.f32 %v495_v23, %v445_v21  ;;  %v696_v27 = vpop.f32.mrb[1].mxu0 }
 0x17a   : > { %v498_v29 = vpop.f32.mrb[2].mxu0 }
 0x17b   : > { %v499_v30 = vadd.f32 %v498_v29, %v450_v24  ;;  %v697_v31 = vpop.f32.mrb[3].mxu0  ;;  %v506_v32 = vadd.f32 %v677_v26, %v496_v25 }
 0x17d   : > { %v507_v33 = vadd.f32 %v678_v28, %v499_v30 }
 0x17f   : > { %v682_v34 = vpack.c.bf16 %v507_v33, %v506_v32 }
 0x181   : > { %683 = vst [vmem:[%s397_s20] sm:$0xff] %v682_v34  }
 0x182 PF: > { %s15_s22 = sadd.s32 1, %s786_s22   ;;  %s921_s18 = smov %s774_s19 }
 0x183   : > { %p12_p10 = scmp.ge.s32.totalorder %s15_s22, 4   ;;  %s922_s19 = smov %s862_s27 }
 0x184   : > { %s923_s20 = smov %s782_s21  ;;  %s924_s21 = smov %s926_s23 }
 0x185   :  { %14 = sbr.rel (!%p12_p10) target bundleno = 3 (0x3), region = 168 }

// kernel: tile.18
= control target key start
LH: loop header
LB: loop body
LE: loop exit
PB: predicated region body
PF: predicated region fallthrough
CT: control target
= control target key end

     0   :  { %s22_s0 = inlined_call_operand.vmem [shape: f32[8], index: 0, kind: input, shape index: {}]   ;;  %s23_s1 = inlined_call_operand.vmem [shape: f32[2,8], index: 1, kind: output, shape index: {}]  }
   0x1   :  { %v4_v0 = vld [vmem:[%s22_s0] ss:$0 sm:$0xff] }
   0x2   :  { %5 = vst [vmem:[%s23_s1] sm:$0x3] %v4_v0 }

// kernel: generator_forward.14
= control target key start
LH: loop header
LB: loop body
LE: loop exit
PB: predicated region body
PF: predicated region fallthrough
CT: control target
= control target key end

     0   :  { %s765_s18 = smov 0   ;;  %s767_s19 = smov 0   ;;  %s853_s0 = inlined_call_operand.vmem [shape: bf16[2,16,256], index: 0, kind: input, shape index: {}, may-alias: {0,1}]   ;;  %s854_s1 = inlined_call_operand.vmem [shape: bf16[2,16,256], index: 1, kind: input, shape index: {}, may-alias: {0,1}]   ;;  %s855_s2 = inlined_call_operand.vmem [shape: bf16[8,48], index: 2, kind: input, shape index: {}]   ;;  %s856_s3 = inlined_call_operand.vmem [shape: f32[8,1], index: 3, kind: input, shape index: {}]   ;;  %s857_s4 = inlined_call_operand.vmem [shape: bf16[2,8,128], index: 4, kind: input, shape index: {}]   ;;  %s858_s5 = inlined_call_operand.vmem [shape: bf16[2,8,128], index: 5, kind: output, shape index: {}]  }
   0x1   :  { %s769_s20 = smov 0   ;;  %s771_s21 = smov 0  }
   0x2   :  { %s773_s22 = smov 0  }
   0x3 LB: > { %s27_s23 = sadd.s32 1, %s724_s21  ;;  %p43_p1 = scmp.ne.s32.totalorder %s716_s19, %s712_s18  ;;  %s728_s22 = sphi %s773_s22, %s15_s22   ;;  %s724_s21 = sphi %s771_s21, %s863_s21   ;;  %s720_s20 = sphi %s769_s20, %s862_s20   ;;  %s716_s19 = sphi %s767_s19, %s861_s19   ;;  %s712_s18 = sphi %s765_s18, %s860_s18  }
   0x4   : > { %p29_p0 = scmp.ge.s32.totalorder %s27_s23, 2  ;;  %p44_p2 = scmp.eq.s32.totalorder %s728_s22, 0 }
   0x5   : > { %s36_s26 = sadd.s32 1, %s716_s19  ;;  %p607_p5 = scmp.ge.s32.totalorder %s728_s22, 2 }
   0x6   : > { %s865_s23 = smov (%p29_p0, %s27_s23), 0  ;;  %p796_p3 = por %p44_p2, %p43_p1 }
   0x7   : > { %s31_s25 = ssub.s32 %s724_s21, %s865_s23  ;;  %203 = sbr.rel (%p607_p5) target bundleno = 28 (0x1c), region = 24 }
   0x8   : > { %p34_p4 = scmp.eq.s32.totalorder %s31_s25, 0 }
   0xa   : > { %s804_s27 = scalar_select %p34_p4, %s716_s19, %s36_s26  }
   0xe   : > { %206 = sbr.rel (!%p796_p3) target bundleno = 21 (0x15), region = 28  ;;  %s208_s28 = sand.u32 (%p796_p3), 1, %s716_s19  }
   0xf   : > { %s626_s29 = sshll.u32 (%p796_p3), %s724_s21, 4  ;;  %s608_s30 = sshll.u32 (%p796_p3), %s208_s28, 3 }
  0x10   : > { %s214_s8 = scalar_lea.vmem (%p796_p3), %s853_s0, %s626_s29  ;;  %s210_s9 = scalar_lea.vmem (%p796_p3), [#allocation2], %s608_s30 }
  0x11   : > { %v230_v0 = vld [vmem:[%s214_s8] sm:$0xf] (%p796_p3)  ;;  %v232_v1 = vld [vmem:[%s214_s8 + $0x8] sm:$0xf] (%p796_p3) }
  0x12   : > { %231 = vst [vmem:[%s210_s9] sm:$0xf] (%p796_p3), %v230_v0  ;;  %233 = vst [vmem:[%s210_s9 + $0x4] sm:$0xf] (%p796_p3), %v232_v1 }
  0x15 PF: > { %260 = sbr.rel (!%p796_p3) target bundleno = 28 (0x1c), region = 69  ;;  %s262_s10 = sand.u32 (%p796_p3), 1, %s716_s19  }
  0x16   : > { %s627_s11 = sshll.u32 (%p796_p3), %s724_s21, 4  ;;  %s611_s12 = sshll.u32 (%p796_p3), %s262_s10, 3 }
  0x17   : > { %s525_s15 = scalar_lea.vmem (%p796_p3), %s854_s1, %s627_s11  ;;  %s264_s16 = scalar_lea.vmem (%p796_p3), [#allocation3], %s611_s12 }
  0x18   : > { %v614_v2 = vld [vmem:[%s525_s15 + $0x4] sm:$0xf] (%p796_p3)  ;;  %v615_v3 = vld [vmem:[%s525_s15 + $0xc] sm:$0xf] (%p796_p3) }
  0x19   : > { %286 = vst [vmem:[%s264_s16] sm:$0xf] (%p796_p3), %v614_v2  ;;  %288 = vst [vmem:[%s264_s16 + $0x4] sm:$0xf] (%p796_p3), %v615_v3 }
  0x1c PF: > { %p616_p6 = scmp.ge.s32.totalorder %s728_s22, 1  ;;  %p324_p7 = scmp.lt.s32.totalorder %s728_s22, 3 }
  0x1e   : > { %p325_p8 = pnand %p616_p6, %p324_p7 }
  0x1f   : > { %s331_s17 = sand.u32 (!%p325_p8), 1, %s712_s18   ;;  %v730_v4 = vmov (!%p325_p8), 0.0   ;;  %vm731_vm1 = vmmov (!%p325_p8), 0   ;;  %s732_s28 = smov (!%p325_p8), 124   ;;  %v734_v11 = vmov (!%p325_p8), 0   ;;  %v434_v12 = vld [vmem:[%s856_s3] sm:$0xff] (!%p325_p8) }
  0x20   : > { %328 = sbr.rel (%p325_p8) target bundleno = 384 (0x180), region = 114  ;;  %s617_s24 = sshll.u32 (!%p325_p8), %s331_s17, 3  ;;  %632 = vmatprep.subr.bf16.mxu0 (!%p325_p8), %v730_v4  ;;  %638 = vmatprep.mubr.msk.bf16.mxu0 (!%p325_p8), %vm731_vm1, %v730_v4  ;;  %vm423_vm3 = vcmask (!%p325_p8), 1031168   ;;  %vm430_vm4 = vcmask (!%p325_p8), 1014784   ;;  %v433_v19 = vld [vmem:[%s855_s2] sm:$0xf] (!%p325_p8) }
  0x21   : > { %s333_s25 = scalar_lea.vmem (!%p325_p8), [#allocation2], %s617_s24  ;;  %s340_s26 = scalar_lea.vmem (!%p325_p8), [#allocation3], %s617_s24  ;;  %687 = vset.pattern.permute.xlu0 (!%p325_p8), %v734_v11  ;;  %vm440_vm5 = vcmask (!%p325_p8), 392192  }
  0x22   : > { %v688_v5 = vld [vmem:[%s333_s25] sm:$0xff] (!%p325_p8)   ;;  %v689_v6 = vld [vmem:[%s340_s26] sm:$0xff] (!%p325_p8)   ;;  %s733_s29 = smov (!%p325_p8), 126   ;;  %p379_p9 = scmp.lt.s32.totalorder (!%p325_p8), %s720_s20, 1 }
  0x23   : > { %vm411_vm0 = vcmp.ge.bf16.partialorder (!%p325_p8), %v688_v5, 0  ;;  %v413_v7 = vmul.bf16 (!%p325_p8), 1036860877, %v688_v5  ;;  %vm412_vm2 = vcmp.ge.bf16.partialorder (!%p325_p8), %v689_v6, 0  ;;  %v414_v8 = vmul.bf16 (!%p325_p8), 1036860877, %v689_v6 }
  0x25   : > { %v415_v9 = vsel (!%p325_p8), %vm411_vm0, %v688_v5, %v413_v7  ;;  %v416_v10 = vsel (!%p325_p8), %vm412_vm2, %v689_v6, %v414_v8 }
  0x26   : > { %426 = vrot.lane.b32.xlu1 (!%p325_p8), %v415_v9, %s732_s28  ;;  %419 = vrot.lane.b32.xlu0 (!%p325_p8), %v415_v9, %s733_s29 }
  0x27   : > { %633 = vmatpush3.bf16.msra.mxu0 %v415_v9  ;;  %s867_s20 = smov (!%p379_p9, %s720_s20), 1 }
  0x28   : > { %634 = vmatprep.subr.bf16.mxu0 %v730_v4  ;;  %s619_s8 = sshll.u32 %s867_s20, 2 }
  0x29   : > { %s385_s11 = scalar_lea.vmem %s857_s4, %s619_s8  ;;  %s392_s14 = scalar_lea.vmem %s858_s5, %s619_s8 }
  0x2a   : > { %428 = vrot.lane.b32.xlu1 %v416_v10, %s732_s28  ;;  %421 = vrot.lane.b32.xlu0 %v416_v10, %s733_s29  ;;  %v484_v20 = vld [vmem:[%s385_s11] sm:$0xf] }
  0x2b   : > { %v485_v22 = vunpack.c.l.bf16 %v484_v20 }
  0x2e   : > { %437 = vperm.xlu0 %687, %v434_v12  }
  0x98   : > { %v427_v13 = vpop.permute.xlu1 %426  ;;  %v420_v14 = vpop.permute.xlu0 %419 }
  0x9c   : > { %v422_v15 = vpop.permute.xlu0 %421  ;;  %v429_v17 = vpop.permute.xlu1 %428 }
  0x9d   : > { %v424_v16 = vsel %vm423_vm3, %v420_v14, %v422_v15  ;;  %v431_v18 = vsel %vm430_vm4, %v427_v13, %v429_v17 }
  0x9e   : > { %635 = vmatpush3.bf16.msra.mxu0 %v424_v16 }
  0x9f   : > { %636 = vmatprep.subr.bf16.mxu0 %v730_v4 }
  0xa2   : > { %637 = vmatpush3.bf16.msra.mxu0 %v431_v18 }
  0xa5   : > { %639 = vmatmul.mubr.msk.bf16.vlgmr.msra.gmra.mrb[0].mxu0 %vm440_vm5, %v433_v19 }
  0xad   : > { %v438_v21 = vpop.permute.xlu0 %437 }
 0x178   : > { %v478_v23 = vpop.f32.mrb[0].mxu0 }
 0x179   : > { %v479_v24 = vadd.f32 %v478_v23, %v438_v21  ;;  %v640_v25 = vpop.f32.mrb[1].mxu0 }
 0x17a   : > { %v481_v26 = vpop.f32.mrb[2].mxu0 }
 0x17b   : > { %v486_v27 = vadd.f32 %v485_v22, %v479_v24  ;;  %v641_v28 = vpop.f32.mrb[3].mxu0 }
 0x17d   : > { %v487_v29 = vpack.c.bf16 %v486_v27, %v486_v27 }
 0x17f   : > { %488 = vst [vmem:[%s392_s14] sm:$0xf] %v487_v29 }
 0x180 PF: > { %s15_s22 = sadd.s32 1, %s728_s22   ;;  %s860_s18 = smov %s716_s19 }
 0x181   : > { %p12_p10 = scmp.ge.s32.totalorder %s15_s22, 4   ;;  %s861_s19 = smov %s804_s27 }
 0x182   : > { %s862_s20 = smov %s724_s21  ;;  %s863_s21 = smov %s865_s23 }
 0x183   :  { %14 = sbr.rel (!%p12_p10) target bundleno = 3 (0x3), region = 168 }

// kernel: generator_forward.13
= control target key start
LH: loop header
LB: loop body
LE: loop exit
PB: predicated region body
PF: predicated region fallthrough
CT: control target
= control target key end

     0   :  { %s686_s15 = smov 0   ;;  %s688_s16 = smov 0   ;;  %s771_s0 = inlined_call_operand.vmem [shape: bf16[2,16,256], index: 0, kind: input, shape index: {}, may-alias: {0,1}]   ;;  %s772_s1 = inlined_call_operand.vmem [shape: bf16[2,16,256], index: 1, kind: input, shape index: {}, may-alias: {0,1}]   ;;  %s773_s2 = inlined_call_operand.vmem [shape: bf16[8,48], index: 2, kind: input, shape index: {}]   ;;  %s774_s3 = inlined_call_operand.vmem [shape: f32[8,1], index: 3, kind: input, shape index: {}]   ;;  %s775_s4 = inlined_call_operand.vmem [shape: bf16[2,8,128], index: 4, kind: output, shape index: {}]  }
   0x1   :  { %s690_s17 = smov 0   ;;  %s692_s18 = smov 0  }
   0x2   :  { %s694_s19 = smov 0  }
   0x3 LB: > { %s26_s20 = sadd.s32 1, %s650_s18  ;;  %p42_p1 = scmp.ne.s32.totalorder %s642_s16, %s638_s15  ;;  %s654_s19 = sphi %s694_s19, %s14_s19   ;;  %s650_s18 = sphi %s692_s18, %s780_s18   ;;  %s646_s17 = sphi %s690_s17, %s779_s17   ;;  %s642_s16 = sphi %s688_s16, %s778_s16   ;;  %s638_s15 = sphi %s686_s15, %s777_s15  }
   0x4   : > { %p28_p0 = scmp.ge.s32.totalorder %s26_s20, 2  ;;  %p43_p2 = scmp.eq.s32.totalorder %s654_s19, 0 }
   0x5   : > { %s35_s23 = sadd.s32 1, %s642_s16  ;;  %p534_p5 = scmp.ge.s32.totalorder %s654_s19, 2 }
   0x6   : > { %s782_s20 = smov (%p28_p0, %s26_s20), 0  ;;  %p717_p3 = por %p43_p2, %p42_p1 }
   0x7   : > { %s30_s22 = ssub.s32 %s650_s18, %s782_s20  ;;  %174 = sbr.rel (%p534_p5) target bundleno = 28 (0x1c), region = 24 }
   0x8   : > { %p33_p4 = scmp.eq.s32.totalorder %s30_s22, 0 }
   0xa   : > { %s725_s24 = scalar_select %p33_p4, %s642_s16, %s35_s23  }
   0xe   : > { %177 = sbr.rel (!%p717_p3) target bundleno = 21 (0x15), region = 28  ;;  %s179_s25 = sand.u32 (%p717_p3), 1, %s642_s16  }
   0xf   : > { %s552_s26 = sshll.u32 (%p717_p3), %s650_s18, 4  ;;  %s535_s27 = sshll.u32 (%p717_p3), %s179_s25, 3 }
  0x10   : > { %s185_s30 = scalar_lea.vmem (%p717_p3), %s771_s0, %s552_s26  ;;  %s181_s5 = scalar_lea.vmem (%p717_p3), [#allocation2], %s535_s27 }
  0x11   : > { %v201_v0 = vld [vmem:[%s185_s30] sm:$0xf] (%p717_p3)  ;;  %v203_v1 = vld [vmem:[%s185_s30 + $0x8] sm:$0xf] (%p717_p3) }
  0x12   : > { %202 = vst [vmem:[%s181_s5] sm:$0xf] (%p717_p3), %v201_v0  ;;  %204 = vst [vmem:[%s181_s5 + $0x4] sm:$0xf] (%p717_p3), %v203_v1 }
  0x15 PF: > { %231 = sbr.rel (!%p717_p3) target bundleno = 28 (0x1c), region = 69  ;;  %s233_s6 = sand.u32 (%p717_p3), 1, %s642_s16  }
  0x16   : > { %s553_s7 = sshll.u32 (%p717_p3), %s650_s18, 4  ;;  %s538_s8 = sshll.u32 (%p717_p3), %s233_s6, 3 }
  0x17   : > { %s467_s11 = scalar_lea.vmem (%p717_p3), %s772_s1, %s553_s7  ;;  %s235_s12 = scalar_lea.vmem (%p717_p3), [#allocation3], %s538_s8 }
  0x18   : > { %v541_v2 = vld [vmem:[%s467_s11 + $0x4] sm:$0xf] (%p717_p3)  ;;  %v542_v3 = vld [vmem:[%s467_s11 + $0xc] sm:$0xf] (%p717_p3) }
  0x19   : > { %257 = vst [vmem:[%s235_s12] sm:$0xf] (%p717_p3), %v541_v2  ;;  %259 = vst [vmem:[%s235_s12 + $0x4] sm:$0xf] (%p717_p3), %v542_v3 }
  0x1c PF: > { %p543_p6 = scmp.ge.s32.totalorder %s654_s19, 1  ;;  %p285_p7 = scmp.lt.s32.totalorder %s654_s19, 3 }
  0x1e   : > { %p286_p8 = pnand %p543_p6, %p285_p7 }
  0x1f   : > { %s292_s13 = sand.u32 (!%p286_p8), 1, %s638_s15   ;;  %v656_v4 = vmov (!%p286_p8), 0.0   ;;  %vm657_vm1 = vmmov (!%p286_p8), 0   ;;  %s658_s23 = smov (!%p286_p8), 126   ;;  %v660_v11 = vmov (!%p286_p8), 0   ;;  %v379_v12 = vld [vmem:[%s774_s3] sm:$0xff] (!%p286_p8) }
  0x20   : > { %289 = sbr.rel (%p286_p8) target bundleno = 382 (0x17e), region = 110  ;;  %s544_s14 = sshll.u32 (!%p286_p8), %s292_s13, 3  ;;  %558 = vmatprep.subr.bf16.mxu0 (!%p286_p8), %v656_v4  ;;  %564 = vmatprep.mubr.msk.bf16.mxu0 (!%p286_p8), %vm657_vm1, %v656_v4  ;;  %vm368_vm3 = vcmask (!%p286_p8), 1039360   ;;  %vm375_vm4 = vcmask (!%p286_p8), 1031168   ;;  %v378_v19 = vld [vmem:[%s773_s2] sm:$0xf] (!%p286_p8) }
  0x21   : > { %s294_s21 = scalar_lea.vmem (!%p286_p8), [#allocation2], %s544_s14  ;;  %s301_s22 = scalar_lea.vmem (!%p286_p8), [#allocation3], %s544_s14  ;;  %613 = vset.pattern.permute.xlu0 (!%p286_p8), %v660_v11  ;;  %vm385_vm5 = vcmask (!%p286_p8), 392192  }
  0x22   : > { %v614_v5 = vld [vmem:[%s294_s21] sm:$0xff] (!%p286_p8)   ;;  %v615_v6 = vld [vmem:[%s301_s22] sm:$0xff] (!%p286_p8)   ;;  %s659_s25 = smov (!%p286_p8), 127   ;;  %p331_p9 = scmp.lt.s32.totalorder (!%p286_p8), %s646_s17, 1 }
  0x23   : > { %vm356_vm0 = vcmp.ge.bf16.partialorder (!%p286_p8), %v614_v5, 0  ;;  %v358_v7 = vmul.bf16 (!%p286_p8), 1036860877, %v614_v5  ;;  %vm357_vm2 = vcmp.ge.bf16.partialorder (!%p286_p8), %v615_v6, 0  ;;  %v359_v8 = vmul.bf16 (!%p286_p8), 1036860877, %v615_v6 }
  0x25   : > { %v360_v9 = vsel (!%p286_p8), %vm356_vm0, %v614_v5, %v358_v7  ;;  %v361_v10 = vsel (!%p286_p8), %vm357_vm2, %v615_v6, %v359_v8 }
  0x26   : > { %371 = vrot.lane.b32.xlu1 (!%p286_p8), %v360_v9, %s658_s23  ;;  %364 = vrot.lane.b32.xlu0 (!%p286_p8), %v360_v9, %s659_s25 }
  0x27   : > { %559 = vmatpush3.bf16.msra.mxu0 %v360_v9  ;;  %s784_s17 = smov (!%p331_p9, %s646_s17), 1 }
  0x28   : > { %560 = vmatprep.subr.bf16.mxu0 %v656_v4  ;;  %s546_s29 = sshll.u32 %s784_s17, 2 }
  0x29   : > { %s337_s6 = scalar_lea.vmem %s775_s4, %s546_s29 }
  0x2a   : > { %373 = vrot.lane.b32.xlu1 %v361_v10, %s658_s23  ;;  %366 = vrot.lane.b32.xlu0 %v361_v10, %s659_s25 }
  0x2e   : > { %382 = vperm.xlu0 %613, %v379_v12  }
  0x98   : > { %v372_v13 = vpop.permute.xlu1 %371  ;;  %v365_v14 = vpop.permute.xlu0 %364 }
  0x9c   : > { %v367_v15 = vpop.permute.xlu0 %366  ;;  %v374_v17 = vpop.permute.xlu1 %373 }
  0x9d   : > { %v369_v16 = vsel %vm368_vm3, %v365_v14, %v367_v15  ;;  %v376_v18 = vsel %vm375_vm4, %v372_v13, %v374_v17 }
  0x9e   : > { %561 = vmatpush3.bf16.msra.mxu0 %v369_v16 }
  0x9f   : > { %562 = vmatprep.subr.bf16.mxu0 %v656_v4 }
  0xa2   : > { %563 = vmatpush3.bf16.msra.mxu0 %v376_v18 }
  0xa5   : > { %565 = vmatmul.mubr.msk.bf16.vlgmr.msra.gmra.mrb[0].mxu0 %vm385_vm5, %v378_v19 }
  0xad   : > { %v383_v20 = vpop.permute.xlu0 %382 }
 0x178   : > { %v423_v21 = vpop.f32.mrb[0].mxu0 }
 0x179   : > { %v424_v22 = vadd.f32 %v423_v21, %v383_v20  ;;  %v566_v23 = vpop.f32.mrb[1].mxu0 }
 0x17a   : > { %v426_v24 = vpop.f32.mrb[2].mxu0 }
 0x17b   : > { %v429_v25 = vpack.c.bf16 %v424_v22, %v424_v22  ;;  %v567_v26 = vpop.f32.mrb[3].mxu0 }
 0x17d   : > { %430 = vst [vmem:[%s337_s6] sm:$0xf] %v429_v25 }
 0x17e PF: > { %s14_s19 = sadd.s32 1, %s654_s19   ;;  %s777_s15 = smov %s642_s16 }
 0x17f   : > { %p11_p10 = scmp.ge.s32.totalorder %s14_s19, 4   ;;  %s778_s16 = smov %s725_s24 }
 0x180   : > { %s779_s17 = smov %s650_s18  ;;  %s780_s18 = smov %s782_s20 }
 0x181   :  { %13 = sbr.rel (!%p11_p10) target bundleno = 3 (0x3), region = 161 }

// kernel: generator_forward.15
= control target key start
LH: loop header
LB: loop body
LE: loop exit
PB: predicated region body
PF: predicated region fallthrough
CT: control target
= control target key end

     0   :  { %s736_s15 = smov 0   ;;  %s738_s16 = smov 0   ;;  %s829_s0 = inlined_call_operand.vmem [shape: bf16[2,16,256], index: 0, kind: input, shape index: {}, may-alias: {0,1}]   ;;  %s830_s1 = inlined_call_operand.vmem [shape: bf16[2,16,256], index: 1, kind: input, shape index: {}, may-alias: {0,1}]   ;;  %s831_s2 = inlined_call_operand.vmem [shape: bf16[8,112], index: 2, kind: input, shape index: {}]   ;;  %s832_s3 = inlined_call_operand.vmem [shape: f32[8,1], index: 3, kind: input, shape index: {}]   ;;  %s833_s4 = inlined_call_operand.vmem [shape: f32[2,8,128], index: 4, kind: output, shape index: {}]  }
   0x1   :  { %s740_s17 = smov 0   ;;  %s742_s18 = smov 0  }
   0x2   :  { %s744_s19 = smov 0  }
   0x3 LB: > { %s26_s20 = sadd.s32 1, %s696_s18  ;;  %p42_p1 = scmp.ne.s32.totalorder %s688_s16, %s684_s15  ;;  %s700_s19 = sphi %s744_s19, %s14_s19   ;;  %s696_s18 = sphi %s742_s18, %s838_s18   ;;  %s692_s17 = sphi %s740_s17, %s837_s17   ;;  %s688_s16 = sphi %s738_s16, %s836_s16   ;;  %s684_s15 = sphi %s736_s15, %s835_s15  }
   0x4   : > { %p28_p0 = scmp.ge.s32.totalorder %s26_s20, 2  ;;  %p43_p2 = scmp.eq.s32.totalorder %s700_s19, 0 }
   0x5   : > { %s35_s23 = sadd.s32 1, %s688_s16  ;;  %p562_p5 = scmp.ge.s32.totalorder %s700_s19, 2 }
   0x6   : > { %s840_s20 = smov (%p28_p0, %s26_s20), 0  ;;  %p767_p3 = por %p43_p2, %p42_p1 }
   0x7   : > { %s30_s22 = ssub.s32 %s696_s18, %s840_s20  ;;  %174 = sbr.rel (%p562_p5) target bundleno = 28 (0x1c), region = 24 }
   0x8   : > { %p33_p4 = scmp.eq.s32.totalorder %s30_s22, 0 }
   0xa   : > { %s775_s24 = scalar_select %p33_p4, %s688_s16, %s35_s23  }
   0xe   : > { %177 = sbr.rel (!%p767_p3) target bundleno = 21 (0x15), region = 28  ;;  %s179_s25 = sand.u32 (%p767_p3), 1, %s688_s16  }
   0xf   : > { %s580_s26 = sshll.u32 (%p767_p3), %s696_s18, 4  ;;  %s563_s27 = sshll.u32 (%p767_p3), %s179_s25, 3 }
  0x10   : > { %s185_s30 = scalar_lea.vmem (%p767_p3), %s829_s0, %s580_s26  ;;  %s181_s5 = scalar_lea.vmem (%p767_p3), [#allocation2], %s563_s27 }
  0x11   : > { %v201_v0 = vld [vmem:[%s185_s30] sm:$0xf] (%p767_p3)  ;;  %v203_v1 = vld [vmem:[%s185_s30 + $0x8] sm:$0xf] (%p767_p3) }
  0x12   : > { %202 = vst [vmem:[%s181_s5] sm:$0xf] (%p767_p3), %v201_v0  ;;  %204 = vst [vmem:[%s181_s5 + $0x4] sm:$0xf] (%p767_p3), %v203_v1 }
  0x15 PF: > { %231 = sbr.rel (!%p767_p3) target bundleno = 28 (0x1c), region = 69  ;;  %s233_s6 = sand.u32 (%p767_p3), 1, %s688_s16  }
  0x16   : > { %s581_s7 = sshll.u32 (%p767_p3), %s696_s18, 4  ;;  %s566_s8 = sshll.u32 (%p767_p3), %s233_s6, 3 }
  0x17   : > { %s495_s11 = scalar_lea.vmem (%p767_p3), %s830_s1, %s581_s7  ;;  %s235_s12 = scalar_lea.vmem (%p767_p3), [#allocation3], %s566_s8 }
  0x18   : > { %v569_v2 = vld [vmem:[%s495_s11 + $0x4] sm:$0xf] (%p767_p3)  ;;  %v570_v3 = vld [vmem:[%s495_s11 + $0xc] sm:$0xf] (%p767_p3) }
  0x19   : > { %257 = vst [vmem:[%s235_s12] sm:$0xf] (%p767_p3), %v569_v2  ;;  %259 = vst [vmem:[%s235_s12 + $0x4] sm:$0xf] (%p767_p3), %v570_v3 }
  0x1c PF: > { %p571_p6 = scmp.ge.s32.totalorder %s700_s19, 1  ;;  %p285_p7 = scmp.lt.s32.totalorder %s700_s19, 3 }
  0x1e   : > { %p286_p8 = pnand %p571_p6, %p285_p7 }
  0x1f   : > { %s292_s13 = sand.u32 (!%p286_p8), 1, %s684_s15   ;;  %v702_v4 = vmov (!%p286_p8), 0.0   ;;  %s703_s23 = smov (!%p286_p8), 126   ;;  %vm707_vm2 = vmmov (!%p286_p8), 0   ;;  %v709_v11 = vmov (!%p286_p8), 0   ;;  %v407_v12 = vld [vmem:[%s832_s3] sm:$0xff] (!%p286_p8) }
  0x20   : > { %289 = sbr.rel (%p286_p8) target bundleno = 407 (0x197), region = 110  ;;  %s572_s14 = sshll.u32 (!%p286_p8), %s292_s13, 3  ;;  %590 = vmatprep.subr.bf16.mxu0 (!%p286_p8), %v702_v4  ;;  %604 = vmatprep.mubr.msk.bf16.mxu0 (!%p286_p8), %vm707_vm2, %v702_v4  ;;  %vm368_vm3 = vcmask (!%p286_p8), 1039360   ;;  %vm375_vm4 = vcmask (!%p286_p8), 1031168   ;;  %vm382_vm5 = vcmask (!%p286_p8), 1022976   ;;  %vm389_vm6 = vcmask (!%p286_p8), 1014784  }
  0x21   : > { %s294_s21 = scalar_lea.vmem (!%p286_p8), [#allocation2], %s572_s14  ;;  %s301_s22 = scalar_lea.vmem (!%p286_p8), [#allocation3], %s572_s14  ;;  %657 = vset.pattern.permute.xlu0 (!%p286_p8), %v709_v11  ;;  %vm396_vm7 = vcmask (!%p286_p8), 1006592   ;;  %vm403_vm8 = vcmask (!%p286_p8), 998400   ;;  %v406_v31 = vld [vmem:[%s831_s2] sm:$0xf] (!%p286_p8) }
  0x22   : > { %v658_v5 = vld [vmem:[%s294_s21] sm:$0xff] (!%p286_p8)   ;;  %v659_v6 = vld [vmem:[%s301_s22] sm:$0xff] (!%p286_p8)   ;;  %s704_s25 = smov (!%p286_p8), 127   ;;  %s705_s15 = smov (!%p286_p8), 125   ;;  %vm413_vm9 = vcmask (!%p286_p8), 916480  }
  0x23   : > { %vm356_vm0 = vcmp.ge.bf16.partialorder (!%p286_p8), %v658_v5, 0  ;;  %v358_v7 = vmul.bf16 (!%p286_p8), 1036860877, %v658_v5  ;;  %vm357_vm1 = vcmp.ge.bf16.partialorder (!%p286_p8), %v659_v6, 0  ;;  %v359_v8 = vmul.bf16 (!%p286_p8), 1036860877, %v659_v6 }
  0x24   : > { %s706_s26 = smov (!%p286_p8), 124   ;;  %s708_s27 = smov (!%p286_p8), 123  }
  0x25   : > { %v360_v9 = vsel (!%p286_p8), %vm356_vm0, %v658_v5, %v358_v7  ;;  %v361_v10 = vsel (!%p286_p8), %vm357_vm1, %v659_v6, %v359_v8  ;;  %s710_s28 = smov (!%p286_p8), 122   ;;  %p331_p9 = scmp.lt.s32.totalorder (!%p286_p8), %s692_s17, 1 }
  0x26   : > { %371 = vrot.lane.b32.xlu1 (!%p286_p8), %v360_v9, %s703_s23  ;;  %364 = vrot.lane.b32.xlu0 (!%p286_p8), %v360_v9, %s704_s25 }
  0x27   : > { %591 = vmatpush3.bf16.msra.mxu0 %v360_v9  ;;  %s842_s17 = smov (!%p331_p9, %s692_s17), 1 }
  0x28   : > { %592 = vmatprep.subr.bf16.mxu0 %v702_v4  ;;  %s574_s7 = sshll.u32 %s842_s17, 3 }
  0x29   : > { %s337_s10 = scalar_lea.vmem %s833_s4, %s574_s7 }
  0x2a   : > { %373 = vrot.lane.b32.xlu1 %v361_v10, %s703_s23  ;;  %366 = vrot.lane.b32.xlu0 %v361_v10, %s704_s25 }
  0x2e   : > { %380 = vrot.lane.b32.xlu1 %v361_v10, %s705_s15  ;;  %378 = vrot.lane.b32.xlu0 %v360_v9, %s705_s15 }
  0x32   : > { %387 = vrot.lane.b32.xlu1 %v361_v10, %s706_s26  ;;  %385 = vrot.lane.b32.xlu0 %v360_v9, %s706_s26 }
  0x36   : > { %394 = vrot.lane.b32.xlu1 %v361_v10, %s708_s27  ;;  %392 = vrot.lane.b32.xlu0 %v360_v9, %s708_s27 }
  0x3a   : > { %401 = vrot.lane.b32.xlu1 %v361_v10, %s710_s28  ;;  %399 = vrot.lane.b32.xlu0 %v360_v9, %s710_s28 }
  0x3e   : > { %410 = vperm.xlu0 %657, %v407_v12  }
  0x98   : > { %v372_v13 = vpop.permute.xlu1 %371  ;;  %v365_v14 = vpop.permute.xlu0 %364 }
  0x9c   : > { %v374_v15 = vpop.permute.xlu1 %373  ;;  %v367_v16 = vpop.permute.xlu0 %366 }
  0x9d   : > { %v369_v17 = vsel %vm368_vm3, %v365_v14, %v367_v16  ;;  %v376_v20 = vsel %vm375_vm4, %v372_v13, %v374_v15 }
  0x9e   : > { %593 = vmatpush3.bf16.msra.mxu0 %v369_v17 }
  0x9f   : > { %594 = vmatprep.subr.bf16.mxu0 %v702_v4 }
  0xa0   : > { %v381_v18 = vpop.permute.xlu1 %380  ;;  %v379_v19 = vpop.permute.xlu0 %378 }
  0xa1   : > { %v383_v21 = vsel %vm382_vm5, %v379_v19, %v381_v18 }
  0xa2   : > { %595 = vmatpush3.bf16.msra.mxu0 %v376_v20 }
  0xa3   : > { %596 = vmatprep.subr.bf16.mxu0 %v702_v4 }
  0xa4   : > { %v388_v22 = vpop.permute.xlu1 %387  ;;  %v386_v23 = vpop.permute.xlu0 %385 }
  0xa5   : > { %v390_v24 = vsel %vm389_vm6, %v386_v23, %v388_v22 }
  0xa6   : > { %597 = vmatpush3.bf16.msra.mxu0 %v383_v21 }
  0xa7   : > { %598 = vmatprep.subr.bf16.mxu0 %v702_v4 }
  0xa8   : > { %v395_v25 = vpop.permute.xlu1 %394  ;;  %v393_v26 = vpop.permute.xlu0 %392 }
  0xa9   : > { %v397_v27 = vsel %vm396_vm7, %v393_v26, %v395_v25 }
  0xaa   : > { %599 = vmatpush3.bf16.msra.mxu0 %v390_v24 }
  0xab   : > { %600 = vmatprep.subr.bf16.mxu0 %v702_v4 }
  0xac   : > { %v402_v28 = vpop.permute.xlu1 %401  ;;  %v400_v29 = vpop.permute.xlu0 %399 }
  0xad   : > { %v404_v30 = vsel %vm403_vm8, %v400_v29, %v402_v28 }
  0xae   : > { %601 = vmatpush3.bf16.msra.mxu0 %v397_v27 }
  0xaf   : > { %602 = vmatprep.subr.bf16.mxu0 %v702_v4 }
  0xb2   : > { %603 = vmatpush3.bf16.msra.mxu0 %v404_v30 }
  0xb5   : > { %605 = vmatmul.mubr.msk.bf16.vlgmr.msra.gmra.mrb[0].mxu0 %vm413_vm9, %v406_v31 }
  0xbd   : > { %v411_v32 = vpop.permute.xlu0 %410 }
 0x188   : > { %v451_v33 = vpop.f32.mrb[0].mxu0 }
 0x189   : > { %v452_v34 = vadd.f32 %v451_v33, %v411_v32  ;;  %v606_v35 = vpop.f32.mrb[1].mxu0 }
 0x18a   : > { %v454_v36 = vpop.f32.mrb[2].mxu0 }
 0x18b   : > { %660 = vtanh.f32 %v452_v34  ;;  %v607_v37 = vpop.f32.mrb[3].mxu0 }
 0x195   : > { %v661_v38 = vpop.eup %660 }
 0x196   : > { %458 = vst [vmem:[%s337_s10] sm:$0xff] %v661_v38 }
 0x197 PF: > { %s14_s19 = sadd.s32 1, %s700_s19   ;;  %s835_s15 = smov %s688_s16 }
 0x198   : > { %p11_p10 = scmp.ge.s32.totalorder %s14_s19, 4   ;;  %s836_s16 = smov %s775_s24 }
 0x199   : > { %s837_s17 = smov %s696_s18  ;;  %s838_s18 = smov %s840_s20 }
 0x19a   :  { %13 = sbr.rel (!%p11_p10) target bundleno = 3 (0x3), region = 161 }

</bundles_post_ra>
